<compile_context>
chip_gen: v7x
topology: tpu7x:2x2x1
jax: 0.10.0
libtpu: 0.0.40
codegen_flags: <defaults>
</compile_context>

<pallas_src>
import math
import functools

import jax
import jax.numpy as jnp
from jax import lax
from jax.experimental import pallas as pl
from jax.experimental.pallas import tpu as pltpu

# ----------------------------- configuration (small shapes) -----------------------------
CLASSES = ["Bar", "Position", "Pitch", "Duration"]
N_TOKENS = [5, 17, 30, 18]          # vocab size per CP token type
EMB_SIZES = [16, 16, 16, 16]        # per-type embedding size (repo uses 256 each)
HIDDEN = 32                         # bert hidden_size
N_HEADS = 4
HEAD_DIM = HIDDEN // N_HEADS
INTERMEDIATE = 64                   # bert intermediate_size
N_LAYERS = 2
SEQ = 8
BATCH = 2
LN_EPS = 1e-12                      # HF BERT layer_norm_eps
MASK_NEG = -10000.0                 # BERT additive attention-mask bias
PROJ_TOTAL = sum(N_TOKENS)          # 70
PROJ_PAD = 128                      # lane-dense packed MLM-head output width
VEC_PAD = 128                       # lane width of the packed bias/LN-param array

# ------------- row layout of the packed (VEC_ROWS, 128) bias / LN-param array -------------
V_ELN_G = 0                         # embeddings LayerNorm gamma
V_ELN_B = 1                         # embeddings LayerNorm beta
V_LAYER = 2                         # first per-layer row
V_PER_LAYER = 7
V_BO, V_LN1G, V_LN1B, V_B1, V_B2, V_LN2G, V_LN2B = range(V_PER_LAYER)
V_PROJ_B = V_LAYER + V_PER_LAYER * N_LAYERS
VEC_ROWS = V_PROJ_B + 1


# ----------------------------- in-kernel helpers -----------------------------
def _layer_norm(x, g, b):
    mu = jnp.mean(x, axis=-1, keepdims=True)
    var = jnp.mean((x - mu) ** 2, axis=-1, keepdims=True)
    return (x - mu) * lax.rsqrt(var + LN_EPS) * g + b


def _gelu_erf(x):
    # exact (erf-based) GELU, as used by BERT
    return 0.5 * x * (1.0 + lax.erf(x * (1.0 / math.sqrt(2.0))))


# ----------------------------- fused forward kernel -----------------------------
def fused_forward_kernel(
    emb_ref,       # (BS, sum(EMB_SIZES))  concatenated, sqrt-scaled CP embeddings
    bias_ref,      # (NH, BS, BS)          additive attention bias (padding + block-diag)
    pos_in_ref,    # (BS, H)               position emb + token-type-0 emb + in_linear bias
    in_w_ref,      # (sum(EMB_SIZES), H)
    wqkv_h_ref,    # (L*3*NH, H, HD)       per-head Q/K/V weights (Q pre-scaled by 1/sqrt(HD))
    bqkv_h_ref,    # (L*3, NH, 1, HD)      per-head Q/K/V biases  (Q pre-scaled)
    wo_h_ref,      # (L*NH, HD, H)         per-head output-projection weights
    ffn_w1_ref,    # (L, H, INTERMEDIATE)
    ffn_w2_ref,    # (L, INTERMEDIATE, H)
    proj_w_ref,    # (H, PROJ_PAD)         packed + zero-padded MLM heads
    vec_ref,       # (VEC_ROWS, 128)       packed (1,dim) biases / LN params
    out_ref,       # (BS, PROJ_PAD)
):
    NH, BS, _ = bias_ref.shape
    H = HIDDEN
    HD = HEAD_DIM

    def vrow(r, w):
        # (1, w) view of a packed parameter row (static indices -> free)
        return vec_ref[r:r + 1, 0:w]

    # ---- in_linear + (pos + token-type-0 + in_b) + embeddings LayerNorm ----
    x = jnp.dot(emb_ref[...], in_w_ref[...], preferred_element_type=jnp.float32)
    x = x + pos_in_ref[...]
    h = _layer_norm(x, vrow(V_ELN_G, H), vrow(V_ELN_B, H))        # (BS, H)

    # attention bias, fully materialized once -> no re-broadcasts inside the layer loop
    bias = bias_ref[...]                                          # (NH, BS, BS)

    # ---- encoder layers (statically unrolled) ----
    for l in range(N_LAYERS):
        vb = V_LAYER + V_PER_LAYER * l

        # Per-head Q/K/V projections, built directly in head-major (NH, BS, HD) layout
        # via tiny 2-D MXU dots (pack-time weight slices) -> no lane-axis activation slices.
        def proj_heads(j):
            cols = [
                jnp.dot(h, wqkv_h_ref[(l * 3 + j) * NH + hd],
                        preferred_element_type=jnp.float32)       # (BS, HD)
                for hd in range(NH)
            ]
            return jnp.stack(cols, axis=0) + bqkv_h_ref[l * 3 + j]   # (NH, BS, HD)

        qh = proj_heads(0)   # 1/sqrt(HD) already folded into weights + bias
        kh = proj_heads(1)
        vh = proj_heads(2)

        # All heads and all (batch*seq) tokens in TWO einsums with a single leading
        # batch dim (the head axis).  Cross-sequence pairs are killed by the -10000
        # block-diagonal bias (exp underflows to exactly 0 in f32), so this equals the
        # per-sequence attention of the reference model.
        s = jnp.einsum("hnd,hmd->hnm", qh, kh,
                       preferred_element_type=jnp.float32)        # (NH, BS, BS)
        s = s + bias
        s = s - jnp.max(s, axis=-1, keepdims=True)
        p = jnp.exp(s)
        p = p * pl.reciprocal(jnp.sum(p, axis=-1, keepdims=True), approx=True)
        ctx = jnp.einsum("hnm,hmd->hnd", p, vh,
                         preferred_element_type=jnp.float32)      # (NH, BS, HD)

        # Output projection as a sum of per-head dots (no lane-axis concat of heads).
        attn_out = vrow(vb + V_BO, H)
        for hd in range(NH):
            attn_out = attn_out + jnp.dot(ctx[hd], wo_h_ref[l * NH + hd],
                                          preferred_element_type=jnp.float32)
        h1 = _layer_norm(h + attn_out, vrow(vb + V_LN1G, H), vrow(vb + V_LN1B, H))

        # FFN
        ff = (jnp.dot(h1, ffn_w1_ref[l], preferred_element_type=jnp.float32)
              + vrow(vb + V_B1, INTERMEDIATE))
        ff = _gelu_erf(ff)
        ff = (jnp.dot(ff, ffn_w2_ref[l], preferred_element_type=jnp.float32)
              + vrow(vb + V_B2, H))
        h = _layer_norm(h1 + ff, vrow(vb + V_LN2G, H), vrow(vb + V_LN2B, H))

    # ---- all 4 MLM heads fused into one lane-dense (BS, 128) matmul ----
    out_ref[...] = (jnp.dot(h, proj_w_ref[...], preferred_element_type=jnp.float32)
                    + vrow(V_PROJ_B, PROJ_PAD))


# ----------------------------- parameter packing for the fused kernel -----------------------------
def pack_fused_params(params):
    """Re-pack the per-layer / per-head parameters into the fused-kernel layout."""
    qscale = 1.0 / math.sqrt(HEAD_DIM)
    NH, HD = N_HEADS, HEAD_DIM

    def vec_row(v):
        v = jnp.asarray(v, jnp.float32).reshape(1, -1)
        return jnp.pad(v, ((0, 0), (0, VEC_PAD - v.shape[1])))

    wqkv_h, bqkv_h, wo_h, w1s, w2s = [], [], [], [], []
    vec_rows = [vec_row(params["emb_ln_g"]), vec_row(params["emb_ln_b"])]

    for lp in params["layers"]:
        # fold the 1/sqrt(head_dim) attention scale into the Q projection (weight AND bias)
        qkv = ((lp["wq"] * qscale, lp["bq"] * qscale),
               (lp["wk"], lp["bk"]),
               (lp["wv"], lp["bv"]))
        for w, b in qkv:
            for hd in range(NH):
                wqkv_h.append(w[:, hd * HD:(hd + 1) * HD])            # (H, HD)
            bqkv_h.append(b.reshape(NH, 1, HD))                        # (NH, 1, HD)
        for hd in range(NH):
            wo_h.append(lp["wo"][hd * HD:(hd + 1) * HD, :])            # (HD, H)
        vec_rows += [vec_row(lp["bo"]),
                     vec_row(lp["ln1_g"]), vec_row(lp["ln1_b"]),
                     vec_row(lp["b1"]), vec_row(lp["b2"]),
                     vec_row(lp["ln2_g"]), vec_row(lp["ln2_b"])]
        w1s.append(lp["w1"])
        w2s.append(lp["w2"])

    # pack the 4 MLM heads into one zero-padded, 128-lane-dense projection
    proj_w = jnp.concatenate(params["proj_w"], axis=1)                 # (H, 70)
    proj_b = jnp.concatenate(params["proj_b"], axis=1)                 # (1, 70)
    proj_w = jnp.pad(proj_w, ((0, 0), (0, PROJ_PAD - proj_w.shape[1])))
    vec_rows.append(vec_row(proj_b))
    vec = jnp.concatenate(vec_rows, axis=0)                            # (VEC_ROWS, 128)
    assert vec.shape == (VEC_ROWS, VEC_PAD)

    # (pos emb + token-type-0 emb + in_linear bias) folded into one per-position constant
    pos_in = params["pos_emb"] + params["tok_emb"] + params["in_b"]    # (SEQ, H)

    return dict(
        # sqrt(emb_size) scaling folded into the embedding tables
        word_emb=[params["word_emb"][i] * math.sqrt(EMB_SIZES[i]) for i in range(4)],
        in_w=params["in_w"],
        pos_in=pos_in,
        wqkv_h=jnp.stack(wqkv_h, axis=0),    # (L*3*NH, H, HD)
        bqkv_h=jnp.stack(bqkv_h, axis=0),    # (L*3, NH, 1, HD)
        wo_h=jnp.stack(wo_h, axis=0),        # (L*NH, HD, H)
        ffn_w1=jnp.stack(w1s, axis=0),       # (L, H, INTERMEDIATE)
        ffn_w2=jnp.stack(w2s, axis=0),       # (L, INTERMEDIATE, H)
        proj_w=proj_w,                       # (H, PROJ_PAD)
        vec=vec,                             # (VEC_ROWS, 128)
    )


# ----------------------------- model forward (thin JAX glue around one pallas_call) -----------------------------
def midibert_lm_forward(fp, x_ids, attn):
    """x_ids: (B, S, 4) int32 CP token ids; attn: (B, S) float mask. Returns list of 4 logits."""
    B, S, _ = x_ids.shape
    BS = B * S

    # CP embedding lookup (data-dependent gather) + concat, in plain JAX.
    # TODO(synk): embedding-table gather stays outside the Pallas kernel.
    embs = [jnp.take(fp["word_emb"][i], x_ids[..., i], axis=0) for i in range(4)]
    emb = jnp.concatenate(embs, axis=-1).reshape(BS, sum(EMB_SIZES))   # (BS, 64)

    # constant (pos + token-type-0 + in_b), tiled to the flattened rows
    pos_in = jnp.tile(fp["pos_in"][:S], (B, 1))                        # (BS, H)

    # Additive attention bias over the flattened (B*S) token grid:
    #   0      where query and key belong to the same sequence AND the key is not padded
    #  -10000  otherwise (same mechanism HF BERT uses for padding; keeps sequences independent).
    # Fully materialized (NH, BS, BS) so the in-kernel add never re-broadcasts.
    seq_id = jnp.arange(BS, dtype=jnp.int32) // S
    keep = (seq_id[:, None] == seq_id[None, :]) & (attn.reshape(BS)[None, :] > 0.5)
    bias2d = jnp.where(keep, 0.0, MASK_NEG).astype(jnp.float32)        # (BS, BS)
    bias = jnp.broadcast_to(bias2d[None], (N_HEADS, BS, BS))

    vmem_spec = pl.BlockSpec(memory_space=pltpu.MemorySpace.VMEM)
    logits = pl.pallas_call(
        fused_forward_kernel,
        out_shape=jax.ShapeDtypeStruct((BS, PROJ_PAD), jnp.float32),
        in_specs=[vmem_spec] * 11,
        out_specs=vmem_spec,
        compiler_params=pltpu.CompilerParams(vmem_limit_bytes=32 * 1024 * 1024),
    )(
        emb, bias, pos_in,
        fp["in_w"], fp["wqkv_h"], fp["bqkv_h"], fp["wo_h"],
        fp["ffn_w1"], fp["ffn_w2"], fp["proj_w"], fp["vec"],
    )

    # split the packed, zero-padded logits back into the 4 per-token-type heads
    logits = logits.reshape(B, S, PROJ_PAD)
    ys, off = [], 0
    for n in N_TOKENS:
        ys.append(logits[..., off:off + n])
        off += n
    return ys


# ----------------------------- deterministic parameter init -----------------------------
def init_params(key):
    keys = iter(jax.random.split(key, 256))

    def nrm(shape, scale=0.02):
        return scale * jax.random.normal(next(keys), shape, jnp.float32)

    params = {
        "word_emb": [nrm((N_TOKENS[i], EMB_SIZES[i])) for i in range(4)],
        "in_w": nrm((sum(EMB_SIZES), HIDDEN)),
        "in_b": jnp.zeros((1, HIDDEN), jnp.float32),
        "pos_emb": nrm((SEQ, HIDDEN)),
        "tok_emb": nrm((1, HIDDEN)),
        "emb_ln_g": jnp.ones((1, HIDDEN), jnp.float32),
        "emb_ln_b": jnp.zeros((1, HIDDEN), jnp.float32),
        "layers": [],
        "proj_w": [],
        "proj_b": [],
    }
    for _ in range(N_LAYERS):
        params["layers"].append(dict(
            wq=nrm((HIDDEN, HIDDEN)), bq=jnp.zeros((1, HIDDEN), jnp.float32),
            wk=nrm((HIDDEN, HIDDEN)), bk=jnp.zeros((1, HIDDEN), jnp.float32),
            wv=nrm((HIDDEN, HIDDEN)), bv=jnp.zeros((1, HIDDEN), jnp.float32),
            wo=nrm((HIDDEN, HIDDEN)), bo=jnp.zeros((1, HIDDEN), jnp.float32),
            ln1_g=jnp.ones((1, HIDDEN), jnp.float32),
            ln1_b=jnp.zeros((1, HIDDEN), jnp.float32),
            w1=nrm((HIDDEN, INTERMEDIATE)), b1=jnp.zeros((1, INTERMEDIATE), jnp.float32),
            w2=nrm((INTERMEDIATE, HIDDEN)), b2=jnp.zeros((1, HIDDEN), jnp.float32),
            ln2_g=jnp.ones((1, HIDDEN), jnp.float32),
            ln2_b=jnp.zeros((1, HIDDEN), jnp.float32),
        ))
    for i in range(4):
        params["proj_w"].append(nrm((HIDDEN, N_TOKENS[i])))
        params["proj_b"].append(jnp.zeros((1, N_TOKENS[i]), jnp.float32))
    return params


# ----------------------------- main -----------------------------
if __name__ == "__main__":
    key = jax.random.PRNGKey(0)
    kp, kx = jax.random.split(key)
    params = init_params(kp)
    fused_params = pack_fused_params(params)

    # token ids per CP class, each within its own vocab
    id_cols = []
    for i in range(4):
        id_cols.append(
            jax.random.randint(jax.random.fold_in(kx, i), (BATCH, SEQ), 0, N_TOKENS[i])
        )
    x = jnp.stack(id_cols, axis=-1).astype(jnp.int32)                   # (B, S, 4)
    attn = jnp.ones((BATCH, SEQ), jnp.float32).at[1, 6:].set(0.0)       # pad tail of batch 1

    fwd = jax.jit(functools.partial(midibert_lm_forward, fused_params))
    ys = fwd(x, attn)
    for y in ys:
        jax.block_until_ready(y)

    assert len(ys) == 4
    for i, y in enumerate(ys):
        assert y.shape == (BATCH, SEQ, N_TOKENS[i]), y.shape
        assert bool(jnp.all(jnp.isfinite(y)))
    print("KERNEL_OK")
</pallas_src>

<mosaic_0001>
module attributes {stable_mosaic.version = 11 : i64} {
  func.func @fused_forward_kernel(%arg0: memref<16x64xf32, #tpu.memory_space<vmem>>, %arg1: memref<4x16x16xf32, #tpu.memory_space<vmem>>, %arg2: memref<16x32xf32, #tpu.memory_space<vmem>>, %arg3: memref<64x32xf32, #tpu.memory_space<vmem>>, %arg4: memref<24x32x8xf32, #tpu.memory_space<vmem>>, %arg5: memref<6x4x1x8xf32, #tpu.memory_space<vmem>>, %arg6: memref<8x8x32xf32, #tpu.memory_space<vmem>>, %arg7: memref<2x32x64xf32, #tpu.memory_space<vmem>>, %arg8: memref<2x64x32xf32, #tpu.memory_space<vmem>>, %arg9: memref<32x128xf32, #tpu.memory_space<vmem>>, %arg10: memref<17x128xf32, #tpu.memory_space<vmem>>, %arg11: memref<16x128xf32, #tpu.memory_space<vmem>>) attributes {dimension_semantics = [], scalar_prefetch = 0 : i64, scratch_operands = 0 : i64, tpu.core_type = #tpu.core_type<tc>} {
    %c0 = arith.constant 0 : index
    %c0_0 = arith.constant 0 : index
    %0 = vector.load %arg0[%c0, %c0_0] : memref<16x64xf32, #tpu.memory_space<vmem>>, vector<16x64xf32>
    %c0_1 = arith.constant 0 : index
    %c0_2 = arith.constant 0 : index
    %1 = vector.load %arg3[%c0_1, %c0_2] : memref<64x32xf32, #tpu.memory_space<vmem>>, vector<64x32xf32>
    %cst = arith.constant dense<0.000000e+00> : vector<16x32xf32>
    %2 = tpu.matmul %0, %1, %cst {dimension_numbers = #tpu.dot_dimension_numbers<[1], [0], [0], [1], [0, 0, 1, 1], [], []>} : vector<16x64xf32>, vector<64x32xf32>, vector<16x32xf32> -> vector<16x32xf32>
    %c0_3 = arith.constant 0 : index
    %c0_4 = arith.constant 0 : index
    %3 = vector.load %arg2[%c0_3, %c0_4] : memref<16x32xf32, #tpu.memory_space<vmem>>, vector<16x32xf32>
    %4 = arith.addf %2, %3 : vector<16x32xf32>
    %c0_5 = arith.constant 0 : index
    %c0_6 = arith.constant 0 : index
    %5 = vector.load %arg10[%c0_5, %c0_6] : memref<17x128xf32, #tpu.memory_space<vmem>>, vector<1x32xf32>
    %c1 = arith.constant 1 : index
    %c0_7 = arith.constant 0 : index
    %6 = vector.load %arg10[%c1, %c0_7] : memref<17x128xf32, #tpu.memory_space<vmem>>, vector<1x32xf32>
    %cst_8 = arith.constant dense<0.000000e+00> : vector<16xf32>
    %7 = vector.multi_reduction <add>, %4, %cst_8 [1] : vector<16x32xf32> to vector<16xf32>
    %8 = vector.shape_cast %7 : vector<16xf32> to vector<16x1xf32>
    %cst_9 = arith.constant 3.200000e+01 : f32
    %9 = vector.broadcast %cst_9 : f32 to vector<16x1xf32>
    %10 = arith.divf %8, %9 : vector<16x1xf32>
    %11 = vector.broadcast %10 : vector<16x1xf32> to vector<16x32xf32>
    %12 = arith.subf %4, %11 : vector<16x32xf32>
    %13 = arith.mulf %12, %12 : vector<16x32xf32>
    %cst_10 = arith.constant dense<0.000000e+00> : vector<16xf32>
    %14 = vector.multi_reduction <add>, %13, %cst_10 [1] : vector<16x32xf32> to vector<16xf32>
    %15 = vector.shape_cast %14 : vector<16xf32> to vector<16x1xf32>
    %cst_11 = arith.constant 3.200000e+01 : f32
    %16 = vector.broadcast %cst_11 : f32 to vector<16x1xf32>
    %17 = arith.divf %15, %16 : vector<16x1xf32>
    %18 = vector.broadcast %10 : vector<16x1xf32> to vector<16x32xf32>
    %19 = arith.subf %4, %18 : vector<16x32xf32>
    %cst_12 = arith.constant 9.99999996E-13 : f32
    %20 = vector.broadcast %cst_12 : f32 to vector<16x1xf32>
    %21 = arith.addf %17, %20 : vector<16x1xf32>
    %22 = math.rsqrt %21 : vector<16x1xf32>
    %23 = vector.broadcast %22 : vector<16x1xf32> to vector<16x32xf32>
    %24 = arith.mulf %19, %23 : vector<16x32xf32>
    %25 = vector.broadcast %5 : vector<1x32xf32> to vector<16x32xf32>
    %26 = arith.mulf %24, %25 : vector<16x32xf32>
    %27 = vector.broadcast %6 : vector<1x32xf32> to vector<16x32xf32>
    %28 = arith.addf %26, %27 : vector<16x32xf32>
    %c0_13 = arith.constant 0 : index
    %c0_14 = arith.constant 0 : index
    %c0_15 = arith.constant 0 : index
    %29 = vector.load %arg1[%c0_13, %c0_14, %c0_15] : memref<4x16x16xf32, #tpu.memory_space<vmem>>, vector<4x16x16xf32>
    %c0_16 = arith.constant 0 : index
    %c0_17 = arith.constant 0 : index
    %c0_18 = arith.constant 0 : index
    %30 = vector.load %arg4[%c0_16, %c0_17, %c0_18] : memref<24x32x8xf32, #tpu.memory_space<vmem>>, vector<1x32x8xf32>
    %31 = vector.shape_cast %30 : vector<1x32x8xf32> to vector<32x8xf32>
    %cst_19 = arith.constant dense<0.000000e+00> : vector<16x8xf32>
    %32 = tpu.matmul %28, %31, %cst_19 {dimension_numbers = #tpu.dot_dimension_numbers<[1], [0], [0], [1], [0, 0, 1, 1], [], []>} : vector<16x32xf32>, vector<32x8xf32>, vector<16x8xf32> -> vector<16x8xf32>
    %c1_20 = arith.constant 1 : index
    %c0_21 = arith.constant 0 : index
    %c0_22 = arith.constant 0 : index
    %33 = vector.load %arg4[%c1_20, %c0_21, %c0_22] : memref<24x32x8xf32, #tpu.memory_space<vmem>>, vector<1x32x8xf32>
    %34 = vector.shape_cast %33 : vector<1x32x8xf32> to vector<32x8xf32>
    %cst_23 = arith.constant dense<0.000000e+00> : vector<16x8xf32>
    %35 = tpu.matmul %28, %34, %cst_23 {dimension_numbers = #tpu.dot_dimension_numbers<[1], [0], [0], [1], [0, 0, 1, 1], [], []>} : vector<16x32xf32>, vector<32x8xf32>, vector<16x8xf32> -> vector<16x8xf32>
    %c2 = arith.constant 2 : index
    %c0_24 = arith.constant 0 : index
    %c0_25 = arith.constant 0 : index
    %36 = vector.load %arg4[%c2, %c0_24, %c0_25] : memref<24x32x8xf32, #tpu.memory_space<vmem>>, vector<1x32x8xf32>
    %37 = vector.shape_cast %36 : vector<1x32x8xf32> to vector<32x8xf32>
    %cst_26 = arith.constant dense<0.000000e+00> : vector<16x8xf32>
    %38 = tpu.matmul %28, %37, %cst_26 {dimension_numbers = #tpu.dot_dimension_numbers<[1], [0], [0], [1], [0, 0, 1, 1], [], []>} : vector<16x32xf32>, vector<32x8xf32>, vector<16x8xf32> -> vector<16x8xf32>
    %c3 = arith.constant 3 : index
    %c0_27 = arith.constant 0 : index
    %c0_28 = arith.constant 0 : index
    %39 = vector.load %arg4[%c3, %c0_27, %c0_28] : memref<24x32x8xf32, #tpu.memory_space<vmem>>, vector<1x32x8xf32>
    %40 = vector.shape_cast %39 : vector<1x32x8xf32> to vector<32x8xf32>
    %cst_29 = arith.constant dense<0.000000e+00> : vector<16x8xf32>
    %41 = tpu.matmul %28, %40, %cst_29 {dimension_numbers = #tpu.dot_dimension_numbers<[1], [0], [0], [1], [0, 0, 1, 1], [], []>} : vector<16x32xf32>, vector<32x8xf32>, vector<16x8xf32> -> vector<16x8xf32>
    %42 = vector.shape_cast %32 : vector<16x8xf32> to vector<1x16x8xf32>
    %43 = vector.shape_cast %35 : vector<16x8xf32> to vector<1x16x8xf32>
    %44 = vector.shape_cast %38 : vector<16x8xf32> to vector<1x16x8xf32>
    %45 = vector.shape_cast %41 : vector<16x8xf32> to vector<1x16x8xf32>
    %46 = tpu.concatenate %42, %43, %44, %45 in 0 : vector<1x16x8xf32>, vector<1x16x8xf32>, vector<1x16x8xf32>, vector<1x16x8xf32> -> vector<4x16x8xf32>
    %c0_30 = arith.constant 0 : index
    %c0_31 = arith.constant 0 : index
    %c0_32 = arith.constant 0 : index
    %c0_33 = arith.constant 0 : index
    %47 = vector.load %arg5[%c0_30, %c0_31, %c0_32, %c0_33] : memref<6x4x1x8xf32, #tpu.memory_space<vmem>>, vector<1x4x1x8xf32>
    %48 = vector.shape_cast %47 : vector<1x4x1x8xf32> to vector<4x1x8xf32>
    %49 = vector.broadcast %48 : vector<4x1x8xf32> to vector<4x16x8xf32>
    %50 = arith.addf %46, %49 : vector<4x16x8xf32>
    %c4 = arith.constant 4 : index
    %c0_34 = arith.constant 0 : index
    %c0_35 = arith.constant 0 : index
    %51 = vector.load %arg4[%c4, %c0_34, %c0_35] : memref<24x32x8xf32, #tpu.memory_space<vmem>>, vector<1x32x8xf32>
    %52 = vector.shape_cast %51 : vector<1x32x8xf32> to vector<32x8xf32>
    %cst_36 = arith.constant dense<0.000000e+00> : vector<16x8xf32>
    %53 = tpu.matmul %28, %52, %cst_36 {dimension_numbers = #tpu.dot_dimension_numbers<[1], [0], [0], [1], [0, 0, 1, 1], [], []>} : vector<16x32xf32>, vector<32x8xf32>, vector<16x8xf32> -> vector<16x8xf32>
    %c5 = arith.constant 5 : index
    %c0_37 = arith.constant 0 : index
    %c0_38 = arith.constant 0 : index
    %54 = vector.load %arg4[%c5, %c0_37, %c0_38] : memref<24x32x8xf32, #tpu.memory_space<vmem>>, vector<1x32x8xf32>
    %55 = vector.shape_cast %54 : vector<1x32x8xf32> to vector<32x8xf32>
    %cst_39 = arith.constant dense<0.000000e+00> : vector<16x8xf32>
    %56 = tpu.matmul %28, %55, %cst_39 {dimension_numbers = #tpu.dot_dimension_numbers<[1], [0], [0], [1], [0, 0, 1, 1], [], []>} : vector<16x32xf32>, vector<32x8xf32>, vector<16x8xf32> -> vector<16x8xf32>
    %c6 = arith.constant 6 : index
    %c0_40 = arith.constant 0 : index
    %c0_41 = arith.constant 0 : index
    %57 = vector.load %arg4[%c6, %c0_40, %c0_41] : memref<24x32x8xf32, #tpu.memory_space<vmem>>, vector<1x32x8xf32>
    %58 = vector.shape_cast %57 : vector<1x32x8xf32> to vector<32x8xf32>
    %cst_42 = arith.constant dense<0.000000e+00> : vector<16x8xf32>
    %59 = tpu.matmul %28, %58, %cst_42 {dimension_numbers = #tpu.dot_dimension_numbers<[1], [0], [0], [1], [0, 0, 1, 1], [], []>} : vector<16x32xf32>, vector<32x8xf32>, vector<16x8xf32> -> vector<16x8xf32>
    %c7 = arith.constant 7 : index
    %c0_43 = arith.constant 0 : index
    %c0_44 = arith.constant 0 : index
    %60 = vector.load %arg4[%c7, %c0_43, %c0_44] : memref<24x32x8xf32, #tpu.memory_space<vmem>>, vector<1x32x8xf32>
    %61 = vector.shape_cast %60 : vector<1x32x8xf32> to vector<32x8xf32>
    %cst_45 = arith.constant dense<0.000000e+00> : vector<16x8xf32>
    %62 = tpu.matmul %28, %61, %cst_45 {dimension_numbers = #tpu.dot_dimension_numbers<[1], [0], [0], [1], [0, 0, 1, 1], [], []>} : vector<16x32xf32>, vector<32x8xf32>, vector<16x8xf32> -> vector<16x8xf32>
    %63 = vector.shape_cast %53 : vector<16x8xf32> to vector<1x16x8xf32>
    %64 = vector.shape_cast %56 : vector<16x8xf32> to vector<1x16x8xf32>
    %65 = vector.shape_cast %59 : vector<16x8xf32> to vector<1x16x8xf32>
    %66 = vector.shape_cast %62 : vector<16x8xf32> to vector<1x16x8xf32>
    %67 = tpu.concatenate %63, %64, %65, %66 in 0 : vector<1x16x8xf32>, vector<1x16x8xf32>, vector<1x16x8xf32>, vector<1x16x8xf32> -> vector<4x16x8xf32>
    %c1_46 = arith.constant 1 : index
    %c0_47 = arith.constant 0 : index
    %c0_48 = arith.constant 0 : index
    %c0_49 = arith.constant 0 : index
    %68 = vector.load %arg5[%c1_46, %c0_47, %c0_48, %c0_49] : memref<6x4x1x8xf32, #tpu.memory_space<vmem>>, vector<1x4x1x8xf32>
    %69 = vector.shape_cast %68 : vector<1x4x1x8xf32> to vector<4x1x8xf32>
    %70 = vector.broadcast %69 : vector<4x1x8xf32> to vector<4x16x8xf32>
    %71 = arith.addf %67, %70 : vector<4x16x8xf32>
    %c8 = arith.constant 8 : index
    %c0_50 = arith.constant 0 : index
    %c0_51 = arith.constant 0 : index
    %72 = vector.load %arg4[%c8, %c0_50, %c0_51] : memref<24x32x8xf32, #tpu.memory_space<vmem>>, vector<1x32x8xf32>
    %73 = vector.shape_cast %72 : vector<1x32x8xf32> to vector<32x8xf32>
    %cst_52 = arith.constant dense<0.000000e+00> : vector<16x8xf32>
    %74 = tpu.matmul %28, %73, %cst_52 {dimension_numbers = #tpu.dot_dimension_numbers<[1], [0], [0], [1], [0, 0, 1, 1], [], []>} : vector<16x32xf32>, vector<32x8xf32>, vector<16x8xf32> -> vector<16x8xf32>
    %c9 = arith.constant 9 : index
    %c0_53 = arith.constant 0 : index
    %c0_54 = arith.constant 0 : index
    %75 = vector.load %arg4[%c9, %c0_53, %c0_54] : memref<24x32x8xf32, #tpu.memory_space<vmem>>, vector<1x32x8xf32>
    %76 = vector.shape_cast %75 : vector<1x32x8xf32> to vector<32x8xf32>
    %cst_55 = arith.constant dense<0.000000e+00> : vector<16x8xf32>
    %77 = tpu.matmul %28, %76, %cst_55 {dimension_numbers = #tpu.dot_dimension_numbers<[1], [0], [0], [1], [0, 0, 1, 1], [], []>} : vector<16x32xf32>, vector<32x8xf32>, vector<16x8xf32> -> vector<16x8xf32>
    %c10 = arith.constant 10 : index
    %c0_56 = arith.constant 0 : index
    %c0_57 = arith.constant 0 : index
    %78 = vector.load %arg4[%c10, %c0_56, %c0_57] : memref<24x32x8xf32, #tpu.memory_space<vmem>>, vector<1x32x8xf32>
    %79 = vector.shape_cast %78 : vector<1x32x8xf32> to vector<32x8xf32>
    %cst_58 = arith.constant dense<0.000000e+00> : vector<16x8xf32>
    %80 = tpu.matmul %28, %79, %cst_58 {dimension_numbers = #tpu.dot_dimension_numbers<[1], [0], [0], [1], [0, 0, 1, 1], [], []>} : vector<16x32xf32>, vector<32x8xf32>, vector<16x8xf32> -> vector<16x8xf32>
    %c11 = arith.constant 11 : index
    %c0_59 = arith.constant 0 : index
    %c0_60 = arith.constant 0 : index
    %81 = vector.load %arg4[%c11, %c0_59, %c0_60] : memref<24x32x8xf32, #tpu.memory_space<vmem>>, vector<1x32x8xf32>
    %82 = vector.shape_cast %81 : vector<1x32x8xf32> to vector<32x8xf32>
    %cst_61 = arith.constant dense<0.000000e+00> : vector<16x8xf32>
    %83 = tpu.matmul %28, %82, %cst_61 {dimension_numbers = #tpu.dot_dimension_numbers<[1], [0], [0], [1], [0, 0, 1, 1], [], []>} : vector<16x32xf32>, vector<32x8xf32>, vector<16x8xf32> -> vector<16x8xf32>
    %84 = vector.shape_cast %74 : vector<16x8xf32> to vector<1x16x8xf32>
    %85 = vector.shape_cast %77 : vector<16x8xf32> to vector<1x16x8xf32>
    %86 = vector.shape_cast %80 : vector<16x8xf32> to vector<1x16x8xf32>
    %87 = vector.shape_cast %83 : vector<16x8xf32> to vector<1x16x8xf32>
    %88 = tpu.concatenate %84, %85, %86, %87 in 0 : vector<1x16x8xf32>, vector<1x16x8xf32>, vector<1x16x8xf32>, vector<1x16x8xf32> -> vector<4x16x8xf32>
    %c2_62 = arith.constant 2 : index
    %c0_63 = arith.constant 0 : index
    %c0_64 = arith.constant 0 : index
    %c0_65 = arith.constant 0 : index
    %89 = vector.load %arg5[%c2_62, %c0_63, %c0_64, %c0_65] : memref<6x4x1x8xf32, #tpu.memory_space<vmem>>, vector<1x4x1x8xf32>
    %90 = vector.shape_cast %89 : vector<1x4x1x8xf32> to vector<4x1x8xf32>
    %91 = vector.broadcast %90 : vector<4x1x8xf32> to vector<4x16x8xf32>
    %92 = arith.addf %88, %91 : vector<4x16x8xf32>
    "tpu.trace_start"() <{level = 10 : i32, message = "hnd,hmd->hnm"}> : () -> ()
    %cst_66 = arith.constant dense<0.000000e+00> : vector<4x16x16xf32>
    %93 = tpu.matmul %50, %71, %cst_66 {dimension_numbers = #tpu.dot_dimension_numbers<[2], [2], [1], [1], [0, 0, 0, 1, 1, 1], [0], [0]>} : vector<4x16x8xf32>, vector<4x16x8xf32>, vector<4x16x16xf32> -> vector<4x16x16xf32>
    "tpu.trace_stop"() : () -> ()
    %94 = arith.addf %93, %29 : vector<4x16x16xf32>
    %cst_67 = arith.constant dense<0xFF800000> : vector<4x16xf32>
    %95 = vector.multi_reduction <maximumf>, %94, %cst_67 [2] : vector<4x16x16xf32> to vector<4x16xf32>
    %96 = vector.shape_cast %95 : vector<4x16xf32> to vector<4x16x1xf32>
    %97 = vector.broadcast %96 : vector<4x16x1xf32> to vector<4x16x16xf32>
    %98 = arith.subf %94, %97 : vector<4x16x16xf32>
    %99 = math.exp %98 : vector<4x16x16xf32>
    %cst_68 = arith.constant dense<0.000000e+00> : vector<4x16xf32>
    %100 = vector.multi_reduction <add>, %99, %cst_68 [2] : vector<4x16x16xf32> to vector<4x16xf32>
    %101 = vector.shape_cast %100 : vector<4x16xf32> to vector<4x16x1xf32>
    %102 = tpu.reciprocal %101 {approx = true} : vector<4x16x1xf32> -> vector<4x16x1xf32>
    %103 = vector.broadcast %102 : vector<4x16x1xf32> to vector<4x16x16xf32>
    %104 = arith.mulf %99, %103 : vector<4x16x16xf32>
    "tpu.trace_start"() <{level = 10 : i32, message = "hnm,hmd->hnd"}> : () -> ()
    %cst_69 = arith.constant dense<0.000000e+00> : vector<4x16x8xf32>
    %105 = tpu.matmul %104, %92, %cst_69 {dimension_numbers = #tpu.dot_dimension_numbers<[2], [1], [1], [2], [0, 0, 0, 1, 1, 2], [0], [0]>} : vector<4x16x16xf32>, vector<4x16x8xf32>, vector<4x16x8xf32> -> vector<4x16x8xf32>
    "tpu.trace_stop"() : () -> ()
    %c2_70 = arith.constant 2 : index
    %c0_71 = arith.constant 0 : index
    %106 = vector.load %arg10[%c2_70, %c0_71] : memref<17x128xf32, #tpu.memory_space<vmem>>, vector<1x32xf32>
    %107 = vector.extract_strided_slice %105 {offsets = [0, 0, 0], sizes = [1, 16, 8], strides = [1, 1, 1]} : vector<4x16x8xf32> to vector<1x16x8xf32>
    %108 = vector.shape_cast %107 : vector<1x16x8xf32> to vector<16x8xf32>
    %c0_72 = arith.constant 0 : index
    %c0_73 = arith.constant 0 : index
    %c0_74 = arith.constant 0 : index
    %109 = vector.load %arg6[%c0_72, %c0_73, %c0_74] : memref<8x8x32xf32, #tpu.memory_space<vmem>>, vector<1x8x32xf32>
    %110 = vector.shape_cast %109 : vector<1x8x32xf32> to vector<8x32xf32>
    %cst_75 = arith.constant dense<0.000000e+00> : vector<16x32xf32>
    %111 = tpu.matmul %108, %110, %cst_75 {dimension_numbers = #tpu.dot_dimension_numbers<[1], [0], [0], [1], [0, 0, 1, 1], [], []>} : vector<16x8xf32>, vector<8x32xf32>, vector<16x32xf32> -> vector<16x32xf32>
    %112 = vector.broadcast %106 : vector<1x32xf32> to vector<16x32xf32>
    %113 = arith.addf %112, %111 : vector<16x32xf32>
    %114 = vector.extract_strided_slice %105 {offsets = [1, 0, 0], sizes = [1, 16, 8], strides = [1, 1, 1]} : vector<4x16x8xf32> to vector<1x16x8xf32>
    %115 = vector.shape_cast %114 : vector<1x16x8xf32> to vector<16x8xf32>
    %c1_76 = arith.constant 1 : index
    %c0_77 = arith.constant 0 : index
    %c0_78 = arith.constant 0 : index
    %116 = vector.load %arg6[%c1_76, %c0_77, %c0_78] : memref<8x8x32xf32, #tpu.memory_space<vmem>>, vector<1x8x32xf32>
    %117 = vector.shape_cast %116 : vector<1x8x32xf32> to vector<8x32xf32>
    %cst_79 = arith.constant dense<0.000000e+00> : vector<16x32xf32>
    %118 = tpu.matmul %115, %117, %cst_79 {dimension_numbers = #tpu.dot_dimension_numbers<[1], [0], [0], [1], [0, 0, 1, 1], [], []>} : vector<16x8xf32>, vector<8x32xf32>, vector<16x32xf32> -> vector<16x32xf32>
    %119 = arith.addf %113, %118 : vector<16x32xf32>
    %120 = vector.extract_strided_slice %105 {offsets = [2, 0, 0], sizes = [1, 16, 8], strides = [1, 1, 1]} : vector<4x16x8xf32> to vector<1x16x8xf32>
    %121 = vector.shape_cast %120 : vector<1x16x8xf32> to vector<16x8xf32>
    %c2_80 = arith.constant 2 : index
    %c0_81 = arith.constant 0 : index
    %c0_82 = arith.constant 0 : index
    %122 = vector.load %arg6[%c2_80, %c0_81, %c0_82] : memref<8x8x32xf32, #tpu.memory_space<vmem>>, vector<1x8x32xf32>
    %123 = vector.shape_cast %122 : vector<1x8x32xf32> to vector<8x32xf32>
    %cst_83 = arith.constant dense<0.000000e+00> : vector<16x32xf32>
    %124 = tpu.matmul %121, %123, %cst_83 {dimension_numbers = #tpu.dot_dimension_numbers<[1], [0], [0], [1], [0, 0, 1, 1], [], []>} : vector<16x8xf32>, vector<8x32xf32>, vector<16x32xf32> -> vector<16x32xf32>
    %125 = arith.addf %119, %124 : vector<16x32xf32>
    %126 = vector.extract_strided_slice %105 {offsets = [3, 0, 0], sizes = [1, 16, 8], strides = [1, 1, 1]} : vector<4x16x8xf32> to vector<1x16x8xf32>
    %127 = vector.shape_cast %126 : vector<1x16x8xf32> to vector<16x8xf32>
    %c3_84 = arith.constant 3 : index
    %c0_85 = arith.constant 0 : index
    %c0_86 = arith.constant 0 : index
    %128 = vector.load %arg6[%c3_84, %c0_85, %c0_86] : memref<8x8x32xf32, #tpu.memory_space<vmem>>, vector<1x8x32xf32>
    %129 = vector.shape_cast %128 : vector<1x8x32xf32> to vector<8x32xf32>
    %cst_87 = arith.constant dense<0.000000e+00> : vector<16x32xf32>
    %130 = tpu.matmul %127, %129, %cst_87 {dimension_numbers = #tpu.dot_dimension_numbers<[1], [0], [0], [1], [0, 0, 1, 1], [], []>} : vector<16x8xf32>, vector<8x32xf32>, vector<16x32xf32> -> vector<16x32xf32>
    %131 = arith.addf %125, %130 : vector<16x32xf32>
    %132 = arith.addf %28, %131 : vector<16x32xf32>
    %c3_88 = arith.constant 3 : index
    %c0_89 = arith.constant 0 : index
    %133 = vector.load %arg10[%c3_88, %c0_89] : memref<17x128xf32, #tpu.memory_space<vmem>>, vector<1x32xf32>
    %c4_90 = arith.constant 4 : index
    %c0_91 = arith.constant 0 : index
    %134 = vector.load %arg10[%c4_90, %c0_91] : memref<17x128xf32, #tpu.memory_space<vmem>>, vector<1x32xf32>
    %cst_92 = arith.constant dense<0.000000e+00> : vector<16xf32>
    %135 = vector.multi_reduction <add>, %132, %cst_92 [1] : vector<16x32xf32> to vector<16xf32>
    %136 = vector.shape_cast %135 : vector<16xf32> to vector<16x1xf32>
    %cst_93 = arith.constant 3.200000e+01 : f32
    %137 = vector.broadcast %cst_93 : f32 to vector<16x1xf32>
    %138 = arith.divf %136, %137 : vector<16x1xf32>
    %139 = vector.broadcast %138 : vector<16x1xf32> to vector<16x32xf32>
    %140 = arith.subf %132, %139 : vector<16x32xf32>
    %141 = arith.mulf %140, %140 : vector<16x32xf32>
    %cst_94 = arith.constant dense<0.000000e+00> : vector<16xf32>
    %142 = vector.multi_reduction <add>, %141, %cst_94 [1] : vector<16x32xf32> to vector<16xf32>
    %143 = vector.shape_cast %142 : vector<16xf32> to vector<16x1xf32>
    %cst_95 = arith.constant 3.200000e+01 : f32
    %144 = vector.broadcast %cst_95 : f32 to vector<16x1xf32>
    %145 = arith.divf %143, %144 : vector<16x1xf32>
    %146 = vector.broadcast %138 : vector<16x1xf32> to vector<16x32xf32>
    %147 = arith.subf %132, %146 : vector<16x32xf32>
    %cst_96 = arith.constant 9.99999996E-13 : f32
    %148 = vector.broadcast %cst_96 : f32 to vector<16x1xf32>
    %149 = arith.addf %145, %148 : vector<16x1xf32>
    %150 = math.rsqrt %149 : vector<16x1xf32>
    %151 = vector.broadcast %150 : vector<16x1xf32> to vector<16x32xf32>
    %152 = arith.mulf %147, %151 : vector<16x32xf32>
    %153 = vector.broadcast %133 : vector<1x32xf32> to vector<16x32xf32>
    %154 = arith.mulf %152, %153 : vector<16x32xf32>
    %155 = vector.broadcast %134 : vector<1x32xf32> to vector<16x32xf32>
    %156 = arith.addf %154, %155 : vector<16x32xf32>
    %c0_97 = arith.constant 0 : index
    %c0_98 = arith.constant 0 : index
    %c0_99 = arith.constant 0 : index
    %157 = vector.load %arg7[%c0_97, %c0_98, %c0_99] : memref<2x32x64xf32, #tpu.memory_space<vmem>>, vector<1x32x64xf32>
    %158 = vector.shape_cast %157 : vector<1x32x64xf32> to vector<32x64xf32>
    %cst_100 = arith.constant dense<0.000000e+00> : vector<16x64xf32>
    %159 = tpu.matmul %156, %158, %cst_100 {dimension_numbers = #tpu.dot_dimension_numbers<[1], [0], [0], [1], [0, 0, 1, 1], [], []>} : vector<16x32xf32>, vector<32x64xf32>, vector<16x64xf32> -> vector<16x64xf32>
    %c5_101 = arith.constant 5 : index
    %c0_102 = arith.constant 0 : index
    %160 = vector.load %arg10[%c5_101, %c0_102] : memref<17x128xf32, #tpu.memory_space<vmem>>, vector<1x64xf32>
    %161 = vector.broadcast %160 : vector<1x64xf32> to vector<16x64xf32>
    %162 = arith.addf %159, %161 : vector<16x64xf32>
    %cst_103 = arith.constant 5.000000e-01 : f32
    %163 = vector.broadcast %cst_103 : f32 to vector<16x64xf32>
    %164 = arith.mulf %163, %162 : vector<16x64xf32>
    %cst_104 = arith.constant 0.707106769 : f32
    %165 = vector.broadcast %cst_104 : f32 to vector<16x64xf32>
    %166 = arith.mulf %162, %165 : vector<16x64xf32>
    %167 = math.erf %166 : vector<16x64xf32>
    %cst_105 = arith.constant 1.000000e+00 : f32
    %168 = vector.broadcast %cst_105 : f32 to vector<16x64xf32>
    %169 = arith.addf %168, %167 : vector<16x64xf32>
    %170 = arith.mulf %164, %169 : vector<16x64xf32>
    %c0_106 = arith.constant 0 : index
    %c0_107 = arith.constant 0 : index
    %c0_108 = arith.constant 0 : index
    %171 = vector.load %arg8[%c0_106, %c0_107, %c0_108] : memref<2x64x32xf32, #tpu.memory_space<vmem>>, vector<1x64x32xf32>
    %172 = vector.shape_cast %171 : vector<1x64x32xf32> to vector<64x32xf32>
    %cst_109 = arith.constant dense<0.000000e+00> : vector<16x32xf32>
    %173 = tpu.matmul %170, %172, %cst_109 {dimension_numbers = #tpu.dot_dimension_numbers<[1], [0], [0], [1], [0, 0, 1, 1], [], []>} : vector<16x64xf32>, vector<64x32xf32>, vector<16x32xf32> -> vector<16x32xf32>
    %c6_110 = arith.constant 6 : index
    %c0_111 = arith.constant 0 : index
    %174 = vector.load %arg10[%c6_110, %c0_111] : memref<17x128xf32, #tpu.memory_space<vmem>>, vector<1x32xf32>
    %175 = vector.broadcast %174 : vector<1x32xf32> to vector<16x32xf32>
    %176 = arith.addf %173, %175 : vector<16x32xf32>
    %177 = arith.addf %156, %176 : vector<16x32xf32>
    %c7_112 = arith.constant 7 : index
    %c0_113 = arith.constant 0 : index
    %178 = vector.load %arg10[%c7_112, %c0_113] : memref<17x128xf32, #tpu.memory_space<vmem>>, vector<1x32xf32>
    %c8_114 = arith.constant 8 : index
    %c0_115 = arith.constant 0 : index
    %179 = vector.load %arg10[%c8_114, %c0_115] : memref<17x128xf32, #tpu.memory_space<vmem>>, vector<1x32xf32>
    %cst_116 = arith.constant dense<0.000000e+00> : vector<16xf32>
    %180 = vector.multi_reduction <add>, %177, %cst_116 [1] : vector<16x32xf32> to vector<16xf32>
    %181 = vector.shape_cast %180 : vector<16xf32> to vector<16x1xf32>
    %cst_117 = arith.constant 3.200000e+01 : f32
    %182 = vector.broadcast %cst_117 : f32 to vector<16x1xf32>
    %183 = arith.divf %181, %182 : vector<16x1xf32>
    %184 = vector.broadcast %183 : vector<16x1xf32> to vector<16x32xf32>
    %185 = arith.subf %177, %184 : vector<16x32xf32>
    %186 = arith.mulf %185, %185 : vector<16x32xf32>
    %cst_118 = arith.constant dense<0.000000e+00> : vector<16xf32>
    %187 = vector.multi_reduction <add>, %186, %cst_118 [1] : vector<16x32xf32> to vector<16xf32>
    %188 = vector.shape_cast %187 : vector<16xf32> to vector<16x1xf32>
    %cst_119 = arith.constant 3.200000e+01 : f32
    %189 = vector.broadcast %cst_119 : f32 to vector<16x1xf32>
    %190 = arith.divf %188, %189 : vector<16x1xf32>
    %191 = vector.broadcast %183 : vector<16x1xf32> to vector<16x32xf32>
    %192 = arith.subf %177, %191 : vector<16x32xf32>
    %cst_120 = arith.constant 9.99999996E-13 : f32
    %193 = vector.broadcast %cst_120 : f32 to vector<16x1xf32>
    %194 = arith.addf %190, %193 : vector<16x1xf32>
    %195 = math.rsqrt %194 : vector<16x1xf32>
    %196 = vector.broadcast %195 : vector<16x1xf32> to vector<16x32xf32>
    %197 = arith.mulf %192, %196 : vector<16x32xf32>
    %198 = vector.broadcast %178 : vector<1x32xf32> to vector<16x32xf32>
    %199 = arith.mulf %197, %198 : vector<16x32xf32>
    %200 = vector.broadcast %179 : vector<1x32xf32> to vector<16x32xf32>
    %201 = arith.addf %199, %200 : vector<16x32xf32>
    %c12 = arith.constant 12 : index
    %c0_121 = arith.constant 0 : index
    %c0_122 = arith.constant 0 : index
    %202 = vector.load %arg4[%c12, %c0_121, %c0_122] : memref<24x32x8xf32, #tpu.memory_space<vmem>>, vector<1x32x8xf32>
    %203 = vector.shape_cast %202 : vector<1x32x8xf32> to vector<32x8xf32>
    %cst_123 = arith.constant dense<0.000000e+00> : vector<16x8xf32>
    %204 = tpu.matmul %201, %203, %cst_123 {dimension_numbers = #tpu.dot_dimension_numbers<[1], [0], [0], [1], [0, 0, 1, 1], [], []>} : vector<16x32xf32>, vector<32x8xf32>, vector<16x8xf32> -> vector<16x8xf32>
    %c13 = arith.constant 13 : index
    %c0_124 = arith.constant 0 : index
    %c0_125 = arith.constant 0 : index
    %205 = vector.load %arg4[%c13, %c0_124, %c0_125] : memref<24x32x8xf32, #tpu.memory_space<vmem>>, vector<1x32x8xf32>
    %206 = vector.shape_cast %205 : vector<1x32x8xf32> to vector<32x8xf32>
    %cst_126 = arith.constant dense<0.000000e+00> : vector<16x8xf32>
    %207 = tpu.matmul %201, %206, %cst_126 {dimension_numbers = #tpu.dot_dimension_numbers<[1], [0], [0], [1], [0, 0, 1, 1], [], []>} : vector<16x32xf32>, vector<32x8xf32>, vector<16x8xf32> -> vector<16x8xf32>
    %c14 = arith.constant 14 : index
    %c0_127 = arith.constant 0 : index
    %c0_128 = arith.constant 0 : index
    %208 = vector.load %arg4[%c14, %c0_127, %c0_128] : memref<24x32x8xf32, #tpu.memory_space<vmem>>, vector<1x32x8xf32>
    %209 = vector.shape_cast %208 : vector<1x32x8xf32> to vector<32x8xf32>
    %cst_129 = arith.constant dense<0.000000e+00> : vector<16x8xf32>
    %210 = tpu.matmul %201, %209, %cst_129 {dimension_numbers = #tpu.dot_dimension_numbers<[1], [0], [0], [1], [0, 0, 1, 1], [], []>} : vector<16x32xf32>, vector<32x8xf32>, vector<16x8xf32> -> vector<16x8xf32>
    %c15 = arith.constant 15 : index
    %c0_130 = arith.constant 0 : index
    %c0_131 = arith.constant 0 : index
    %211 = vector.load %arg4[%c15, %c0_130, %c0_131] : memref<24x32x8xf32, #tpu.memory_space<vmem>>, vector<1x32x8xf32>
    %212 = vector.shape_cast %211 : vector<1x32x8xf32> to vector<32x8xf32>
    %cst_132 = arith.constant dense<0.000000e+00> : vector<16x8xf32>
    %213 = tpu.matmul %201, %212, %cst_132 {dimension_numbers = #tpu.dot_dimension_numbers<[1], [0], [0], [1], [0, 0, 1, 1], [], []>} : vector<16x32xf32>, vector<32x8xf32>, vector<16x8xf32> -> vector<16x8xf32>
    %214 = vector.shape_cast %204 : vector<16x8xf32> to vector<1x16x8xf32>
    %215 = vector.shape_cast %207 : vector<16x8xf32> to vector<1x16x8xf32>
    %216 = vector.shape_cast %210 : vector<16x8xf32> to vector<1x16x8xf32>
    %217 = vector.shape_cast %213 : vector<16x8xf32> to vector<1x16x8xf32>
    %218 = tpu.concatenate %214, %215, %216, %217 in 0 : vector<1x16x8xf32>, vector<1x16x8xf32>, vector<1x16x8xf32>, vector<1x16x8xf32> -> vector<4x16x8xf32>
    %c3_133 = arith.constant 3 : index
    %c0_134 = arith.constant 0 : index
    %c0_135 = arith.constant 0 : index
    %c0_136 = arith.constant 0 : index
    %219 = vector.load %arg5[%c3_133, %c0_134, %c0_135, %c0_136] : memref<6x4x1x8xf32, #tpu.memory_space<vmem>>, vector<1x4x1x8xf32>
    %220 = vector.shape_cast %219 : vector<1x4x1x8xf32> to vector<4x1x8xf32>
    %221 = vector.broadcast %220 : vector<4x1x8xf32> to vector<4x16x8xf32>
    %222 = arith.addf %218, %221 : vector<4x16x8xf32>
    %c16 = arith.constant 16 : index
    %c0_137 = arith.constant 0 : index
    %c0_138 = arith.constant 0 : index
    %223 = vector.load %arg4[%c16, %c0_137, %c0_138] : memref<24x32x8xf32, #tpu.memory_space<vmem>>, vector<1x32x8xf32>
    %224 = vector.shape_cast %223 : vector<1x32x8xf32> to vector<32x8xf32>
    %cst_139 = arith.constant dense<0.000000e+00> : vector<16x8xf32>
    %225 = tpu.matmul %201, %224, %cst_139 {dimension_numbers = #tpu.dot_dimension_numbers<[1], [0], [0], [1], [0, 0, 1, 1], [], []>} : vector<16x32xf32>, vector<32x8xf32>, vector<16x8xf32> -> vector<16x8xf32>
    %c17 = arith.constant 17 : index
    %c0_140 = arith.constant 0 : index
    %c0_141 = arith.constant 0 : index
    %226 = vector.load %arg4[%c17, %c0_140, %c0_141] : memref<24x32x8xf32, #tpu.memory_space<vmem>>, vector<1x32x8xf32>
    %227 = vector.shape_cast %226 : vector<1x32x8xf32> to vector<32x8xf32>
    %cst_142 = arith.constant dense<0.000000e+00> : vector<16x8xf32>
    %228 = tpu.matmul %201, %227, %cst_142 {dimension_numbers = #tpu.dot_dimension_numbers<[1], [0], [0], [1], [0, 0, 1, 1], [], []>} : vector<16x32xf32>, vector<32x8xf32>, vector<16x8xf32> -> vector<16x8xf32>
    %c18 = arith.constant 18 : index
    %c0_143 = arith.constant 0 : index
    %c0_144 = arith.constant 0 : index
    %229 = vector.load %arg4[%c18, %c0_143, %c0_144] : memref<24x32x8xf32, #tpu.memory_space<vmem>>, vector<1x32x8xf32>
    %230 = vector.shape_cast %229 : vector<1x32x8xf32> to vector<32x8xf32>
    %cst_145 = arith.constant dense<0.000000e+00> : vector<16x8xf32>
    %231 = tpu.matmul %201, %230, %cst_145 {dimension_numbers = #tpu.dot_dimension_numbers<[1], [0], [0], [1], [0, 0, 1, 1], [], []>} : vector<16x32xf32>, vector<32x8xf32>, vector<16x8xf32> -> vector<16x8xf32>
    %c19 = arith.constant 19 : index
    %c0_146 = arith.constant 0 : index
    %c0_147 = arith.constant 0 : index
    %232 = vector.load %arg4[%c19, %c0_146, %c0_147] : memref<24x32x8xf32, #tpu.memory_space<vmem>>, vector<1x32x8xf32>
    %233 = vector.shape_cast %232 : vector<1x32x8xf32> to vector<32x8xf32>
    %cst_148 = arith.constant dense<0.000000e+00> : vector<16x8xf32>
    %234 = tpu.matmul %201, %233, %cst_148 {dimension_numbers = #tpu.dot_dimension_numbers<[1], [0], [0], [1], [0, 0, 1, 1], [], []>} : vector<16x32xf32>, vector<32x8xf32>, vector<16x8xf32> -> vector<16x8xf32>
    %235 = vector.shape_cast %225 : vector<16x8xf32> to vector<1x16x8xf32>
    %236 = vector.shape_cast %228 : vector<16x8xf32> to vector<1x16x8xf32>
    %237 = vector.shape_cast %231 : vector<16x8xf32> to vector<1x16x8xf32>
    %238 = vector.shape_cast %234 : vector<16x8xf32> to vector<1x16x8xf32>
    %239 = tpu.concatenate %235, %236, %237, %238 in 0 : vector<1x16x8xf32>, vector<1x16x8xf32>, vector<1x16x8xf32>, vector<1x16x8xf32> -> vector<4x16x8xf32>
    %c4_149 = arith.constant 4 : index
    %c0_150 = arith.constant 0 : index
    %c0_151 = arith.constant 0 : index
    %c0_152 = arith.constant 0 : index
    %240 = vector.load %arg5[%c4_149, %c0_150, %c0_151, %c0_152] : memref<6x4x1x8xf32, #tpu.memory_space<vmem>>, vector<1x4x1x8xf32>
    %241 = vector.shape_cast %240 : vector<1x4x1x8xf32> to vector<4x1x8xf32>
    %242 = vector.broadcast %241 : vector<4x1x8xf32> to vector<4x16x8xf32>
    %243 = arith.addf %239, %242 : vector<4x16x8xf32>
    %c20 = arith.constant 20 : index
    %c0_153 = arith.constant 0 : index
    %c0_154 = arith.constant 0 : index
    %244 = vector.load %arg4[%c20, %c0_153, %c0_154] : memref<24x32x8xf32, #tpu.memory_space<vmem>>, vector<1x32x8xf32>
    %245 = vector.shape_cast %244 : vector<1x32x8xf32> to vector<32x8xf32>
    %cst_155 = arith.constant dense<0.000000e+00> : vector<16x8xf32>
    %246 = tpu.matmul %201, %245, %cst_155 {dimension_numbers = #tpu.dot_dimension_numbers<[1], [0], [0], [1], [0, 0, 1, 1], [], []>} : vector<16x32xf32>, vector<32x8xf32>, vector<16x8xf32> -> vector<16x8xf32>
    %c21 = arith.constant 21 : index
    %c0_156 = arith.constant 0 : index
    %c0_157 = arith.constant 0 : index
    %247 = vector.load %arg4[%c21, %c0_156, %c0_157] : memref<24x32x8xf32, #tpu.memory_space<vmem>>, vector<1x32x8xf32>
    %248 = vector.shape_cast %247 : vector<1x32x8xf32> to vector<32x8xf32>
    %cst_158 = arith.constant dense<0.000000e+00> : vector<16x8xf32>
    %249 = tpu.matmul %201, %248, %cst_158 {dimension_numbers = #tpu.dot_dimension_numbers<[1], [0], [0], [1], [0, 0, 1, 1], [], []>} : vector<16x32xf32>, vector<32x8xf32>, vector<16x8xf32> -> vector<16x8xf32>
    %c22 = arith.constant 22 : index
    %c0_159 = arith.constant 0 : index
    %c0_160 = arith.constant 0 : index
    %250 = vector.load %arg4[%c22, %c0_159, %c0_160] : memref<24x32x8xf32, #tpu.memory_space<vmem>>, vector<1x32x8xf32>
    %251 = vector.shape_cast %250 : vector<1x32x8xf32> to vector<32x8xf32>
    %cst_161 = arith.constant dense<0.000000e+00> : vector<16x8xf32>
    %252 = tpu.matmul %201, %251, %cst_161 {dimension_numbers = #tpu.dot_dimension_numbers<[1], [0], [0], [1], [0, 0, 1, 1], [], []>} : vector<16x32xf32>, vector<32x8xf32>, vector<16x8xf32> -> vector<16x8xf32>
    %c23 = arith.constant 23 : index
    %c0_162 = arith.constant 0 : index
    %c0_163 = arith.constant 0 : index
    %253 = vector.load %arg4[%c23, %c0_162, %c0_163] : memref<24x32x8xf32, #tpu.memory_space<vmem>>, vector<1x32x8xf32>
    %254 = vector.shape_cast %253 : vector<1x32x8xf32> to vector<32x8xf32>
    %cst_164 = arith.constant dense<0.000000e+00> : vector<16x8xf32>
    %255 = tpu.matmul %201, %254, %cst_164 {dimension_numbers = #tpu.dot_dimension_numbers<[1], [0], [0], [1], [0, 0, 1, 1], [], []>} : vector<16x32xf32>, vector<32x8xf32>, vector<16x8xf32> -> vector<16x8xf32>
    %256 = vector.shape_cast %246 : vector<16x8xf32> to vector<1x16x8xf32>
    %257 = vector.shape_cast %249 : vector<16x8xf32> to vector<1x16x8xf32>
    %258 = vector.shape_cast %252 : vector<16x8xf32> to vector<1x16x8xf32>
    %259 = vector.shape_cast %255 : vector<16x8xf32> to vector<1x16x8xf32>
    %260 = tpu.concatenate %256, %257, %258, %259 in 0 : vector<1x16x8xf32>, vector<1x16x8xf32>, vector<1x16x8xf32>, vector<1x16x8xf32> -> vector<4x16x8xf32>
    %c5_165 = arith.constant 5 : index
    %c0_166 = arith.constant 0 : index
    %c0_167 = arith.constant 0 : index
    %c0_168 = arith.constant 0 : index
    %261 = vector.load %arg5[%c5_165, %c0_166, %c0_167, %c0_168] : memref<6x4x1x8xf32, #tpu.memory_space<vmem>>, vector<1x4x1x8xf32>
    %262 = vector.shape_cast %261 : vector<1x4x1x8xf32> to vector<4x1x8xf32>
    %263 = vector.broadcast %262 : vector<4x1x8xf32> to vector<4x16x8xf32>
    %264 = arith.addf %260, %263 : vector<4x16x8xf32>
    "tpu.trace_start"() <{level = 10 : i32, message = "hnd,hmd->hnm"}> : () -> ()
    %cst_169 = arith.constant dense<0.000000e+00> : vector<4x16x16xf32>
    %265 = tpu.matmul %222, %243, %cst_169 {dimension_numbers = #tpu.dot_dimension_numbers<[2], [2], [1], [1], [0, 0, 0, 1, 1, 1], [0], [0]>} : vector<4x16x8xf32>, vector<4x16x8xf32>, vector<4x16x16xf32> -> vector<4x16x16xf32>
    "tpu.trace_stop"() : () -> ()
    %266 = arith.addf %265, %29 : vector<4x16x16xf32>
    %cst_170 = arith.constant dense<0xFF800000> : vector<4x16xf32>
    %267 = vector.multi_reduction <maximumf>, %266, %cst_170 [2] : vector<4x16x16xf32> to vector<4x16xf32>
    %268 = vector.shape_cast %267 : vector<4x16xf32> to vector<4x16x1xf32>
    %269 = vector.broadcast %268 : vector<4x16x1xf32> to vector<4x16x16xf32>
    %270 = arith.subf %266, %269 : vector<4x16x16xf32>
    %271 = math.exp %270 : vector<4x16x16xf32>
    %cst_171 = arith.constant dense<0.000000e+00> : vector<4x16xf32>
    %272 = vector.multi_reduction <add>, %271, %cst_171 [2] : vector<4x16x16xf32> to vector<4x16xf32>
    %273 = vector.shape_cast %272 : vector<4x16xf32> to vector<4x16x1xf32>
    %274 = tpu.reciprocal %273 {approx = true} : vector<4x16x1xf32> -> vector<4x16x1xf32>
    %275 = vector.broadcast %274 : vector<4x16x1xf32> to vector<4x16x16xf32>
    %276 = arith.mulf %271, %275 : vector<4x16x16xf32>
    "tpu.trace_start"() <{level = 10 : i32, message = "hnm,hmd->hnd"}> : () -> ()
    %cst_172 = arith.constant dense<0.000000e+00> : vector<4x16x8xf32>
    %277 = tpu.matmul %276, %264, %cst_172 {dimension_numbers = #tpu.dot_dimension_numbers<[2], [1], [1], [2], [0, 0, 0, 1, 1, 2], [0], [0]>} : vector<4x16x16xf32>, vector<4x16x8xf32>, vector<4x16x8xf32> -> vector<4x16x8xf32>
    "tpu.trace_stop"() : () -> ()
    %c9_173 = arith.constant 9 : index
    %c0_174 = arith.constant 0 : index
    %278 = vector.load %arg10[%c9_173, %c0_174] : memref<17x128xf32, #tpu.memory_space<vmem>>, vector<1x32xf32>
    %279 = vector.extract_strided_slice %277 {offsets = [0, 0, 0], sizes = [1, 16, 8], strides = [1, 1, 1]} : vector<4x16x8xf32> to vector<1x16x8xf32>
    %280 = vector.shape_cast %279 : vector<1x16x8xf32> to vector<16x8xf32>
    %c4_175 = arith.constant 4 : index
    %c0_176 = arith.constant 0 : index
    %c0_177 = arith.constant 0 : index
    %281 = vector.load %arg6[%c4_175, %c0_176, %c0_177] : memref<8x8x32xf32, #tpu.memory_space<vmem>>, vector<1x8x32xf32>
    %282 = vector.shape_cast %281 : vector<1x8x32xf32> to vector<8x32xf32>
    %cst_178 = arith.constant dense<0.000000e+00> : vector<16x32xf32>
    %283 = tpu.matmul %280, %282, %cst_178 {dimension_numbers = #tpu.dot_dimension_numbers<[1], [0], [0], [1], [0, 0, 1, 1], [], []>} : vector<16x8xf32>, vector<8x32xf32>, vector<16x32xf32> -> vector<16x32xf32>
    %284 = vector.broadcast %278 : vector<1x32xf32> to vector<16x32xf32>
    %285 = arith.addf %284, %283 : vector<16x32xf32>
    %286 = vector.extract_strided_slice %277 {offsets = [1, 0, 0], sizes = [1, 16, 8], strides = [1, 1, 1]} : vector<4x16x8xf32> to vector<1x16x8xf32>
    %287 = vector.shape_cast %286 : vector<1x16x8xf32> to vector<16x8xf32>
    %c5_179 = arith.constant 5 : index
    %c0_180 = arith.constant 0 : index
    %c0_181 = arith.constant 0 : index
    %288 = vector.load %arg6[%c5_179, %c0_180, %c0_181] : memref<8x8x32xf32, #tpu.memory_space<vmem>>, vector<1x8x32xf32>
    %289 = vector.shape_cast %288 : vector<1x8x32xf32> to vector<8x32xf32>
    %cst_182 = arith.constant dense<0.000000e+00> : vector<16x32xf32>
    %290 = tpu.matmul %287, %289, %cst_182 {dimension_numbers = #tpu.dot_dimension_numbers<[1], [0], [0], [1], [0, 0, 1, 1], [], []>} : vector<16x8xf32>, vector<8x32xf32>, vector<16x32xf32> -> vector<16x32xf32>
    %291 = arith.addf %285, %290 : vector<16x32xf32>
    %292 = vector.extract_strided_slice %277 {offsets = [2, 0, 0], sizes = [1, 16, 8], strides = [1, 1, 1]} : vector<4x16x8xf32> to vector<1x16x8xf32>
    %293 = vector.shape_cast %292 : vector<1x16x8xf32> to vector<16x8xf32>
    %c6_183 = arith.constant 6 : index
    %c0_184 = arith.constant 0 : index
    %c0_185 = arith.constant 0 : index
    %294 = vector.load %arg6[%c6_183, %c0_184, %c0_185] : memref<8x8x32xf32, #tpu.memory_space<vmem>>, vector<1x8x32xf32>
    %295 = vector.shape_cast %294 : vector<1x8x32xf32> to vector<8x32xf32>
    %cst_186 = arith.constant dense<0.000000e+00> : vector<16x32xf32>
    %296 = tpu.matmul %293, %295, %cst_186 {dimension_numbers = #tpu.dot_dimension_numbers<[1], [0], [0], [1], [0, 0, 1, 1], [], []>} : vector<16x8xf32>, vector<8x32xf32>, vector<16x32xf32> -> vector<16x32xf32>
    %297 = arith.addf %291, %296 : vector<16x32xf32>
    %298 = vector.extract_strided_slice %277 {offsets = [3, 0, 0], sizes = [1, 16, 8], strides = [1, 1, 1]} : vector<4x16x8xf32> to vector<1x16x8xf32>
    %299 = vector.shape_cast %298 : vector<1x16x8xf32> to vector<16x8xf32>
    %c7_187 = arith.constant 7 : index
    %c0_188 = arith.constant 0 : index
    %c0_189 = arith.constant 0 : index
    %300 = vector.load %arg6[%c7_187, %c0_188, %c0_189] : memref<8x8x32xf32, #tpu.memory_space<vmem>>, vector<1x8x32xf32>
    %301 = vector.shape_cast %300 : vector<1x8x32xf32> to vector<8x32xf32>
    %cst_190 = arith.constant dense<0.000000e+00> : vector<16x32xf32>
    %302 = tpu.matmul %299, %301, %cst_190 {dimension_numbers = #tpu.dot_dimension_numbers<[1], [0], [0], [1], [0, 0, 1, 1], [], []>} : vector<16x8xf32>, vector<8x32xf32>, vector<16x32xf32> -> vector<16x32xf32>
    %303 = arith.addf %297, %302 : vector<16x32xf32>
    %304 = arith.addf %201, %303 : vector<16x32xf32>
    %c10_191 = arith.constant 10 : index
    %c0_192 = arith.constant 0 : index
    %305 = vector.load %arg10[%c10_191, %c0_192] : memref<17x128xf32, #tpu.memory_space<vmem>>, vector<1x32xf32>
    %c11_193 = arith.constant 11 : index
    %c0_194 = arith.constant 0 : index
    %306 = vector.load %arg10[%c11_193, %c0_194] : memref<17x128xf32, #tpu.memory_space<vmem>>, vector<1x32xf32>
    %cst_195 = arith.constant dense<0.000000e+00> : vector<16xf32>
    %307 = vector.multi_reduction <add>, %304, %cst_195 [1] : vector<16x32xf32> to vector<16xf32>
    %308 = vector.shape_cast %307 : vector<16xf32> to vector<16x1xf32>
    %cst_196 = arith.constant 3.200000e+01 : f32
    %309 = vector.broadcast %cst_196 : f32 to vector<16x1xf32>
    %310 = arith.divf %308, %309 : vector<16x1xf32>
    %311 = vector.broadcast %310 : vector<16x1xf32> to vector<16x32xf32>
    %312 = arith.subf %304, %311 : vector<16x32xf32>
    %313 = arith.mulf %312, %312 : vector<16x32xf32>
    %cst_197 = arith.constant dense<0.000000e+00> : vector<16xf32>
    %314 = vector.multi_reduction <add>, %313, %cst_197 [1] : vector<16x32xf32> to vector<16xf32>
    %315 = vector.shape_cast %314 : vector<16xf32> to vector<16x1xf32>
    %cst_198 = arith.constant 3.200000e+01 : f32
    %316 = vector.broadcast %cst_198 : f32 to vector<16x1xf32>
    %317 = arith.divf %315, %316 : vector<16x1xf32>
    %318 = vector.broadcast %310 : vector<16x1xf32> to vector<16x32xf32>
    %319 = arith.subf %304, %318 : vector<16x32xf32>
    %cst_199 = arith.constant 9.99999996E-13 : f32
    %320 = vector.broadcast %cst_199 : f32 to vector<16x1xf32>
    %321 = arith.addf %317, %320 : vector<16x1xf32>
    %322 = math.rsqrt %321 : vector<16x1xf32>
    %323 = vector.broadcast %322 : vector<16x1xf32> to vector<16x32xf32>
    %324 = arith.mulf %319, %323 : vector<16x32xf32>
    %325 = vector.broadcast %305 : vector<1x32xf32> to vector<16x32xf32>
    %326 = arith.mulf %324, %325 : vector<16x32xf32>
    %327 = vector.broadcast %306 : vector<1x32xf32> to vector<16x32xf32>
    %328 = arith.addf %326, %327 : vector<16x32xf32>
    %c1_200 = arith.constant 1 : index
    %c0_201 = arith.constant 0 : index
    %c0_202 = arith.constant 0 : index
    %329 = vector.load %arg7[%c1_200, %c0_201, %c0_202] : memref<2x32x64xf32, #tpu.memory_space<vmem>>, vector<1x32x64xf32>
    %330 = vector.shape_cast %329 : vector<1x32x64xf32> to vector<32x64xf32>
    %cst_203 = arith.constant dense<0.000000e+00> : vector<16x64xf32>
    %331 = tpu.matmul %328, %330, %cst_203 {dimension_numbers = #tpu.dot_dimension_numbers<[1], [0], [0], [1], [0, 0, 1, 1], [], []>} : vector<16x32xf32>, vector<32x64xf32>, vector<16x64xf32> -> vector<16x64xf32>
    %c12_204 = arith.constant 12 : index
    %c0_205 = arith.constant 0 : index
    %332 = vector.load %arg10[%c12_204, %c0_205] : memref<17x128xf32, #tpu.memory_space<vmem>>, vector<1x64xf32>
    %333 = vector.broadcast %332 : vector<1x64xf32> to vector<16x64xf32>
    %334 = arith.addf %331, %333 : vector<16x64xf32>
    %cst_206 = arith.constant 5.000000e-01 : f32
    %335 = vector.broadcast %cst_206 : f32 to vector<16x64xf32>
    %336 = arith.mulf %335, %334 : vector<16x64xf32>
    %cst_207 = arith.constant 0.707106769 : f32
    %337 = vector.broadcast %cst_207 : f32 to vector<16x64xf32>
    %338 = arith.mulf %334, %337 : vector<16x64xf32>
    %339 = math.erf %338 : vector<16x64xf32>
    %cst_208 = arith.constant 1.000000e+00 : f32
    %340 = vector.broadcast %cst_208 : f32 to vector<16x64xf32>
    %341 = arith.addf %340, %339 : vector<16x64xf32>
    %342 = arith.mulf %336, %341 : vector<16x64xf32>
    %c1_209 = arith.constant 1 : index
    %c0_210 = arith.constant 0 : index
    %c0_211 = arith.constant 0 : index
    %343 = vector.load %arg8[%c1_209, %c0_210, %c0_211] : memref<2x64x32xf32, #tpu.memory_space<vmem>>, vector<1x64x32xf32>
    %344 = vector.shape_cast %343 : vector<1x64x32xf32> to vector<64x32xf32>
    %cst_212 = arith.constant dense<0.000000e+00> : vector<16x32xf32>
    %345 = tpu.matmul %342, %344, %cst_212 {dimension_numbers = #tpu.dot_dimension_numbers<[1], [0], [0], [1], [0, 0, 1, 1], [], []>} : vector<16x64xf32>, vector<64x32xf32>, vector<16x32xf32> -> vector<16x32xf32>
    %c13_213 = arith.constant 13 : index
    %c0_214 = arith.constant 0 : index
    %346 = vector.load %arg10[%c13_213, %c0_214] : memref<17x128xf32, #tpu.memory_space<vmem>>, vector<1x32xf32>
    %347 = vector.broadcast %346 : vector<1x32xf32> to vector<16x32xf32>
    %348 = arith.addf %345, %347 : vector<16x32xf32>
    %349 = arith.addf %328, %348 : vector<16x32xf32>
    %c14_215 = arith.constant 14 : index
    %c0_216 = arith.constant 0 : index
    %350 = vector.load %arg10[%c14_215, %c0_216] : memref<17x128xf32, #tpu.memory_space<vmem>>, vector<1x32xf32>
    %c15_217 = arith.constant 15 : index
    %c0_218 = arith.constant 0 : index
    %351 = vector.load %arg10[%c15_217, %c0_218] : memref<17x128xf32, #tpu.memory_space<vmem>>, vector<1x32xf32>
    %cst_219 = arith.constant dense<0.000000e+00> : vector<16xf32>
    %352 = vector.multi_reduction <add>, %349, %cst_219 [1] : vector<16x32xf32> to vector<16xf32>
    %353 = vector.shape_cast %352 : vector<16xf32> to vector<16x1xf32>
    %cst_220 = arith.constant 3.200000e+01 : f32
    %354 = vector.broadcast %cst_220 : f32 to vector<16x1xf32>
    %355 = arith.divf %353, %354 : vector<16x1xf32>
    %356 = vector.broadcast %355 : vector<16x1xf32> to vector<16x32xf32>
    %357 = arith.subf %349, %356 : vector<16x32xf32>
    %358 = arith.mulf %357, %357 : vector<16x32xf32>
    %cst_221 = arith.constant dense<0.000000e+00> : vector<16xf32>
    %359 = vector.multi_reduction <add>, %358, %cst_221 [1] : vector<16x32xf32> to vector<16xf32>
    %360 = vector.shape_cast %359 : vector<16xf32> to vector<16x1xf32>
    %cst_222 = arith.constant 3.200000e+01 : f32
    %361 = vector.broadcast %cst_222 : f32 to vector<16x1xf32>
    %362 = arith.divf %360, %361 : vector<16x1xf32>
    %363 = vector.broadcast %355 : vector<16x1xf32> to vector<16x32xf32>
    %364 = arith.subf %349, %363 : vector<16x32xf32>
    %cst_223 = arith.constant 9.99999996E-13 : f32
    %365 = vector.broadcast %cst_223 : f32 to vector<16x1xf32>
    %366 = arith.addf %362, %365 : vector<16x1xf32>
    %367 = math.rsqrt %366 : vector<16x1xf32>
    %368 = vector.broadcast %367 : vector<16x1xf32> to vector<16x32xf32>
    %369 = arith.mulf %364, %368 : vector<16x32xf32>
    %370 = vector.broadcast %350 : vector<1x32xf32> to vector<16x32xf32>
    %371 = arith.mulf %369, %370 : vector<16x32xf32>
    %372 = vector.broadcast %351 : vector<1x32xf32> to vector<16x32xf32>
    %373 = arith.addf %371, %372 : vector<16x32xf32>
    %c0_224 = arith.constant 0 : index
    %c0_225 = arith.constant 0 : index
    %374 = vector.load %arg9[%c0_224, %c0_225] : memref<32x128xf32, #tpu.memory_space<vmem>>, vector<32x128xf32>
    %cst_226 = arith.constant dense<0.000000e+00> : vector<16x128xf32>
    %375 = tpu.matmul %373, %374, %cst_226 {dimension_numbers = #tpu.dot_dimension_numbers<[1], [0], [0], [1], [0, 0, 1, 1], [], []>} : vector<16x32xf32>, vector<32x128xf32>, vector<16x128xf32> -> vector<16x128xf32>
    %c16_227 = arith.constant 16 : index
    %c0_228 = arith.constant 0 : index
    %376 = vector.load %arg10[%c16_227, %c0_228] : memref<17x128xf32, #tpu.memory_space<vmem>>, vector<1x128xf32>
    %377 = vector.broadcast %376 : vector<1x128xf32> to vector<16x128xf32>
    %378 = arith.addf %375, %377 : vector<16x128xf32>
    %c0_229 = arith.constant 0 : index
    %c0_230 = arith.constant 0 : index
    %379 = vector.load %arg11[%c0_229, %c0_230] : memref<16x128xf32, #tpu.memory_space<vmem>>, vector<16x128xf32>
    tpu.vector_store %arg11[%c0_229, %c0_230], %378 {strides = array<i32>} : memref<16x128xf32, #tpu.memory_space<vmem>>, vector<16x128xf32>,
    return
  }
}

</mosaic_0001>

<bundles_post_ra>
// kernel: midibert_lm_forward.1
= control target key start
LH: loop header
LB: loop body
LE: loop exit
PB: predicated region body
PF: predicated region fallthrough
CT: control target
= control target key end

     0   :  { %16 = vsyncpa [#allocation3], 0  ;;  %s7739_s0 = inlined_call_operand.vmem [shape: f32[16,64], index: 0, kind: input, shape index: {}]   ;;  %s7740_s1 = inlined_call_operand.vmem [shape: f32[4,16,16], index: 1, kind: input, shape index: {}]   ;;  %s7741_s2 = inlined_call_operand.vmem [shape: f32[16,32], index: 2, kind: input, shape index: {}]   ;;  %s7742_s3 = inlined_call_operand.hbm [shape: f32[64,32], index: 3, kind: input, shape index: {}]   ;;  %s7743_s4 = inlined_call_operand.vmem [shape: f32[24,32,8], index: 4, kind: input, shape index: {}]   ;;  %s7744_s5 = inlined_call_operand.vmem [shape: f32[6,4,1,8], index: 5, kind: input, shape index: {}]   ;;  %s7745_s6 = inlined_call_operand.hbm [shape: f32[8,8,32], index: 6, kind: input, shape index: {}]   ;;  %s7746_s7 = inlined_call_operand.vmem [shape: f32[2,32,64], index: 7, kind: input, shape index: {}]   ;;  %s7747_s8 = inlined_call_operand.vmem [shape: f32[2,64,32], index: 8, kind: input, shape index: {}]   ;;  %s7748_s9 = inlined_call_operand.vmem [shape: f32[32,128], index: 9, kind: input, shape index: {}]   ;;  %s7749_s10 = inlined_call_operand.vmem [shape: f32[17,128], index: 10, kind: input, shape index: {}]   ;;  %s7750_s11 = inlined_call_operand.vmem [shape: f32[16,128], index: 11, kind: output, shape index: {}]  }
   0x1   :  { %17 = vsyncpa [#allocation5], 0  ;;  %s6816_s17 = smov [#allocation2]   ;;  %s6768_s21 = scalar_lea.hbm %s7742_s3, 1024 }
   0x2   :  { %s29_s18 = sshll.u32 %s6816_s17, 4  ;;  %p6769_p0 = scmp.ne.s32.totalorder %s7742_s3, %s6768_s21  ;;  %s30_s18 = int_to_ptr.vmem [resolvable:$true] %s29_s18 }
   0x3   :  { %p6772_p1 = scmp.lt.u32.totalorder %s6768_s21, %s7742_s3 }
   0x5   :  { %p6774_p2 = pnand %p6772_p1, %p6769_p0 }
   0x7   :  { %6777 = shalt.err (!%p6774_p2)
}
   0x8   :  { %s6778_s26 = scalar_lea.vmem %s30_s18, 1024  ;;  %p6783_p4 = scmp.lt.s32.totalorder %s30_s18, %s30_s18 }
   0x9   :  { %p6779_p3 = scmp.ne.s32.totalorder %s30_s18, %s6778_s26  ;;  %p6784_p5 = scmp.lt.s32.totalorder %s6778_s26, %s6778_s26 }
   0xb   :  { %p6785_p6 = por %p6784_p5, %p6783_p4 }
   0xd   :  { %p6786_p7 = pnand %p6785_p6, %p6779_p3 }
   0xf   :  { %6789 = shalt.err (!%p6786_p7)
}
  0x10   :  { %s6817_s27 = smov 128   ;;  %s6818_s28 = smov 8  }
  0x11   :  { %35 = dma.hbm_to_vmem [thread:$0]  %s7742_s3, 1024, %s30_s18, [#allocation3], %s6817_s27, %s6817_s27, %s6818_s28  }
  0x12   :  { %s6819_s12 = smov [#allocation4]   ;;  %s6790_s16 = scalar_lea.hbm %s7745_s6, 1024 }
  0x13   :  { %s45_s13 = sshll.u32 %s6819_s12, 4  ;;  %p6791_p8 = scmp.ne.s32.totalorder %s7745_s6, %s6790_s16  ;;  %s46_s13 = int_to_ptr.vmem [resolvable:$true] %s45_s13 }
  0x14   :  { %p6794_p9 = scmp.lt.u32.totalorder %s6790_s16, %s7745_s6 }
  0x16   :  { %p6796_p10 = pnand %p6794_p9, %p6791_p8 }
  0x18   :  { %6799 = shalt.err (!%p6796_p10)
}
  0x19   :  { %s6800_s22 = scalar_lea.vmem %s46_s13, 1024  ;;  %p6805_p12 = scmp.lt.s32.totalorder %s46_s13, %s46_s13 }
  0x1a   :  { %p6801_p11 = scmp.ne.s32.totalorder %s46_s13, %s6800_s22  ;;  %p6806_p13 = scmp.lt.s32.totalorder %s6800_s22, %s6800_s22 }
  0x1c   :  { %p6807_p0 = por %p6806_p13, %p6805_p12 }
  0x1e   :  { %p6808_p1 = pnand %p6807_p0, %p6801_p11 }
  0x20   :  { %6811 = shalt.err (!%p6808_p1)
}
  0x21   :  { %51 = dma.hbm_to_vmem [thread:$0]  %s7745_s6, 1024, %s46_s13, [#allocation5], %s6817_s27, %s6817_s27, %s6818_s28  }
  0x22   :  { %6812 = dma.done.wait [#allocation3], 1024  }
  0x23   :  { %6813 = vsyncadd [#allocation3], 4294966272 }
  0x24   :  { %6814 = dma.done.wait [#allocation5], 1024  }
  0x25   :  { %6815 = vsyncadd [#allocation5], 4294966272  ;;  %v68_v0 = vld [vmem:[#allocation2] sm:$0xff]  ;;  %v69_v1 = vld [vmem:[#allocation2 + $0x8] sm:$0xff]  ;;  %vm78_vm0 = vcmask 523264   ;;  %vm162_vm1 = vcmask 261120  }
  0x26   :  { %v70_v2 = vld [vmem:[#allocation2 + $0x10] sm:$0xff]  ;;  %v6304_v3 = vpack.c.bf16 %v69_v1, %v68_v0  ;;  %v71_v4 = vld [vmem:[#allocation2 + $0x18] sm:$0xff]  ;;  %v72_v6 = vld [vmem:[#allocation2 + $0x20] sm:$0xff]  ;;  %vm1285_vm2 = vcmask 64512   ;;  %vm1634_vm4 = vcmask 130048  }
  0x27   :  { %v6308_v5 = vpack.c.bf16 %v71_v4, %v70_v2  ;;  %v73_v7 = vld [vmem:[#allocation2 + $0x28] sm:$0xff]  ;;  %v66_v8 = vld [vmem:[%s7739_s0] sm:$0xff]  ;;  %v74_v10 = vld [vmem:[#allocation2 + $0x30] sm:$0xff] }
  0x28   :  { %6305 = vmatprep.subr.bf16.mxu0 %v6304_v3  ;;  %5814 = vmatprep.mubr.msk.f32.mxu0 %vm78_vm0, %v66_v8  ;;  %v6312_v9 = vpack.c.bf16 %v73_v7, %v72_v6  ;;  %v75_v11 = vld [vmem:[#allocation2 + $0x38] sm:$0xff]  ;;  %v67_v13 = vld [vmem:[%s7739_s0 + $0x8] sm:$0xff]  ;;  %v76_v14 = vld [vmem:[%s7741_s2] sm:$0xff] }
  0x29   :  { %6307 = vmatpush3.bf16.msra.mxu0 %v6304_v3  ;;  %v6316_v12 = vpack.c.bf16 %v75_v11, %v74_v10  ;;  %v77_v16 = vld [vmem:[%s7741_s2 + $0x8] sm:$0xff]  ;;  %v210_v32 = vld [vmem:[%s7743_s4] sm:$0xff]  ;;  %v212_v38 = vld [vmem:[%s7743_s4 + $0x10] sm:$0xff] }
  0x2a   :  { %6309 = vmatprep.subr.bf16.mxu0 %v6308_v5  ;;  %v211_v33 = vld [vmem:[%s7743_s4 + $0x8] sm:$0xff]  ;;  %v5241_v34 = vld [vmem:[%s7743_s4 + $0x40] sm:$0xff]  ;;  %v213_v39 = vld [vmem:[%s7743_s4 + $0x18] sm:$0xff] }
  0x2b   :  { %v6320_v35 = vpack.c.bf16 %v211_v33, %v210_v32  ;;  %v5242_v36 = vld [vmem:[%s7743_s4 + $0x48] sm:$0xff]  ;;  %v5243_v40 = vld [vmem:[%s7743_s4 + $0x50] sm:$0xff]  ;;  %v6324_v41 = vpack.c.bf16 %v213_v39, %v212_v38  ;;  %v5244_v42 = vld [vmem:[%s7743_s4 + $0x58] sm:$0xff] }
  0x2c   :  { %v6336_v37 = vpack.c.bf16 %v5242_v36, %v5241_v34  ;;  %v6340_v43 = vpack.c.bf16 %v5244_v42, %v5243_v40  ;;  %v5235_v44 = vld [vmem:[%s7743_s4 + $0x20] sm:$0xff]  ;;  %v5236_v45 = vld [vmem:[%s7743_s4 + $0x28] sm:$0xff]  ;;  %v5237_v0 = vld [vmem:[%s7743_s4 + $0x30] sm:$0xff] }
  0x2d   :  { %6311 = vmatpush3.bf16.msra.mxu0 %v6308_v5  ;;  %6321 = vmatprep.subr.bf16.mxu1 %v6320_v35  ;;  %v5257_v46 = vld [vmem:[%s7743_s4 + $0x80] sm:$0xff]  ;;  %v6328_v47 = vpack.c.bf16 %v5236_v45, %v5235_v44  ;;  %v5258_v48 = vld [vmem:[%s7743_s4 + $0x88] sm:$0xff]  ;;  %v5238_v2 = vld [vmem:[%s7743_s4 + $0x38] sm:$0xff] }
  0x2e   :  { %6313 = vmatprep.subr.bf16.mxu0 %v6312_v9  ;;  %6323 = vmatpush3.bf16.msra.mxu1 %v6320_v35  ;;  %v6352_v49 = vpack.c.bf16 %v5258_v48, %v5257_v46  ;;  %v5231_v57 = vld [vmem:[%s7749_s10] ss:$0 sm:$0xff]  ;;  %v5232_v59 = vld [vmem:[%s7749_s10 + $0x1] ss:$0 sm:$0xff]  ;;  %v5259_v3 = vld [vmem:[%s7743_s4 + $0x90] sm:$0xff]  ;;  %v6332_v7 = vpack.c.bf16 %v5238_v2, %v5237_v0 }
  0x2f   :  { %6325 = vmatprep.subr.bf16.mxu1 %v6324_v41  ;;  %v5260_v4 = vld [vmem:[%s7743_s4 + $0x98] sm:$0xff]  ;;  %v5247_v6 = vld [vmem:[%s7743_s4 + $0x60] sm:$0xff]  ;;  %v5270_v11 = vld [vmem:[%s7743_s4 + $0xc8] sm:$0xff] }
  0x30   :  { %v6356_v8 = vpack.c.bf16 %v5260_v4, %v5259_v3  ;;  %v5269_v10 = vld [vmem:[%s7743_s4 + $0xc0] sm:$0xff]  ;;  %v5276_v32 = vld [vmem:[%s7743_s4 + $0xe8] sm:$0xff]  ;;  %v5277_v38 = vld [vmem:[%s7743_s4 + $0xf0] sm:$0xff] }
  0x31   :  { %6315 = vmatpush3.bf16.msra.mxu0 %v6312_v9  ;;  %v5248_v9 = vld [vmem:[%s7743_s4 + $0x68] sm:$0xff]  ;;  %v5301_v34 = vld [vmem:[%s7743_s4 + $0x140] sm:$0xff]  ;;  %v5278_v39 = vld [vmem:[%s7743_s4 + $0xf8] sm:$0xff] }
  0x32   :  { %6317 = vmatprep.subr.bf16.mxu0 %v6316_v12  ;;  %6327 = vmatpush3.bf16.msra.mxu1 %v6324_v41  ;;  %v5302_v35 = vld [vmem:[%s7743_s4 + $0x148] sm:$0xff]  ;;  %v5303_v40 = vld [vmem:[%s7743_s4 + $0x150] sm:$0xff]  ;;  %v5304_v41 = vld [vmem:[%s7743_s4 + $0x158] sm:$0xff]  ;;  %v6380_v42 = vpack.c.bf16 %v5278_v39, %v5277_v38 }
  0x33   :  { %6329 = vmatprep.subr.bf16.mxu1 %v6328_v47  ;;  %v5296_v44 = vld [vmem:[%s7743_s4 + $0x128] sm:$0xff]  ;;  %v6404_v45 = vpack.c.bf16 %v5304_v41, %v5303_v40  ;;  %v5298_v48 = vld [vmem:[%s7743_s4 + $0x138] sm:$0xff]  ;;  %v5254_v0 = vld [vmem:[%s7744_s5 + $0x1] ss:$0 sm:$0xff] }
  0x34   :  { %vm7136_vm3 = vmpackc.low %vm1285_vm2, %vm1285_vm2 }
  0x35   :  { %6319 = vmatpush3.bf16.msra.mxu0 %v6316_v12  ;;  %v6344_v12 = vpack.c.bf16 %v5248_v9, %v5247_v6 }
  0x36   :  { %6337 = vmatprep.subr.bf16.mxu0 %v6336_v37 }
  0x38   :  { %5815 = vmatmul.mubr.msk.f32.vlgmr.msra.gmra.mrb[0].mxu0 %vm78_vm0, %v67_v13  ;;  %v6368_v13 = vpack.c.bf16 %v5270_v11, %v5269_v10  ;;  %v5287_v11 = vld [vmem:[%s7744_s5 + $0x6] ss:$0 sm:$0xff] }
  0x39   :  { %6339 = vmatpush3.bf16.msra.mxu0 %v6336_v37  ;;  %v6400_v37 = vpack.c.bf16 %v5302_v35, %v5301_v34  ;;  %v5288_v35 = vld [vmem:[%s7744_s5 + $0x7] ss:$0 sm:$0xff] }
  0x3a   :  { %6341 = vmatprep.subr.bf16.mxu0 %v6340_v43 }
  0x3d   :  { %6343 = vmatpush3.bf16.msra.mxu0 %v6340_v43  ;;  %v5295_v43 = vld [vmem:[%s7743_s4 + $0x120] sm:$0xff] }
  0x3e   :  { %6353 = vmatprep.subr.bf16.mxu0 %v6352_v49  ;;  %v6392_v46 = vpack.c.bf16 %v5296_v44, %v5295_v43  ;;  %v5256_v44 = vld [vmem:[%s7744_s5 + $0x3] ss:$0 sm:$0xff] }
 0x10b   :  { %v5816_v15 = vpop.f32.mrb[0].mxu0 }
 0x10c   :  { %v151_v17 = vpop.f32.mrb[1].mxu0  ;;  %v157_v19 = vadd.f32 %v5816_v15, %v77_v16  ;;  %v5250_v15 = vld [vmem:[%s7743_s4 + $0x78] sm:$0xff]  ;;  %v5271_v16 = vld [vmem:[%s7743_s4 + $0xd0] sm:$0xff] }
 0x10d   :  { %v152_v18 = vadd.f32 %v151_v17, %v76_v14  ;;  %v5249_v14 = vld [vmem:[%s7743_s4 + $0x70] sm:$0xff]  ;;  %v5272_v17 = vld [vmem:[%s7743_s4 + $0xd8] sm:$0xff] }
 0x10e   :  { %v166_v21 = vsel %vm162_vm1, %v157_v19, 0.0 }
 0x10f   :  { %v163_v20 = vsel %vm162_vm1, %v152_v18, 0.0 }
 0x110   :  { %164 = vadd.xlane.f32.xlu0 %v163_v20  ;;  %v5263_v20 = vld [vmem:[%s7743_s4 + $0xa0] sm:$0xff] }
 0x114   :  { %167 = vadd.xlane.f32.xlu0 %v166_v21  ;;  %v5264_v21 = vld [vmem:[%s7743_s4 + $0xa8] sm:$0xff] }
 0x19d   :  { %v165_v22 = vpop.xlane.xlu0 %164 }
 0x19e   :  { %v170_v23 = vmul.f32 0.03125, %v165_v22  ;;  %v5289_v22 = vld [vmem:[%s7743_s4 + $0x100] sm:$0xff] }
 0x1a0   :  { %v172_v24 = vsub.f32 %v152_v18, %v170_v23  ;;  %v6348_v18 = vpack.c.bf16 %v5250_v15, %v5249_v14  ;;  %v5290_v23 = vld [vmem:[%s7743_s4 + $0x108] sm:$0xff]  ;;  %v5255_v15 = vld [vmem:[%s7744_s5 + $0x2] ss:$0 sm:$0xff] }
 0x1a1   :  { %v168_v25 = vpop.xlane.xlu0 %167 }
 0x1a2   :  { %v171_v26 = vmul.f32 0.03125, %v168_v25  ;;  %v174_v27 = vmul.f32 %v172_v24, %v172_v24  ;;  %v6384_v25 = vpack.c.bf16 %v5290_v23, %v5289_v22  ;;  %v5286_v22 = vld [vmem:[%s7744_s5 + $0x5] ss:$0 sm:$0xff]  ;;  %v5317_v23 = vld [vmem:[%s7744_s5 + $0x8] ss:$0 sm:$0xff] }
 0x1a4   :  { %v173_v28 = vsub.f32 %v157_v19, %v171_v26  ;;  %v176_v29 = vsel %vm162_vm1, %v174_v27, 0.0  ;;  %v6372_v19 = vpack.c.bf16 %v5272_v17, %v5271_v16  ;;  %v5265_v26 = vld [vmem:[%s7743_s4 + $0xb0] sm:$0xff]  ;;  %v5266_v27 = vld [vmem:[%s7743_s4 + $0xb8] sm:$0xff] }
 0x1a5   :  { %177 = vadd.xlane.f32.xlu1 %v176_v29  ;;  %v5292_v29 = vld [vmem:[%s7743_s4 + $0x118] sm:$0xff] }
 0x1a6   :  { %v175_v30 = vmul.f32 %v173_v28, %v173_v28 }
 0x1a8   :  { %v179_v31 = vsel %vm162_vm1, %v175_v30, 0.0  ;;  %v6364_v30 = vpack.c.bf16 %v5266_v27, %v5265_v26 }
 0x1a9   :  { %180 = vadd.xlane.f32.xlu1 %v179_v31  ;;  %v5275_v31 = vld [vmem:[%s7743_s4 + $0xe0] sm:$0xff] }
 0x1aa   :  { %v6376_v36 = vpack.c.bf16 %v5276_v32, %v5275_v31 }
 0x232   :  { %v178_v50 = vpop.xlane.xlu1 %177 }
 0x233   :  { %v182_v51 = vmul.f32 0.03125, %v178_v50  ;;  %v5307_v50 = vld [vmem:[%s7743_s4 + $0x160] sm:$0xff] }
 0x235   :  { %v184_v52 = vadd.f32 1e-12, %v182_v51  ;;  %v5308_v51 = vld [vmem:[%s7743_s4 + $0x168] sm:$0xff] }
 0x236   :  { %v181_v53 = vpop.xlane.xlu1 %180 }
 0x237   :  { %6668 = vrsqrt.f32 %v184_v52  ;;  %v183_v54 = vmul.f32 0.03125, %v181_v53  ;;  %v6408_v52 = vpack.c.bf16 %v5308_v51, %v5307_v50  ;;  %v5309_v53 = vld [vmem:[%s7743_s4 + $0x170] sm:$0xff]  ;;  %v5318_v50 = vld [vmem:[%s7744_s5 + $0x9] ss:$0 sm:$0xff] }
 0x239   :  { %v185_v55 = vadd.f32 1e-12, %v183_v54  ;;  %v5310_v54 = vld [vmem:[%s7743_s4 + $0x178] sm:$0xff] }
 0x23b   :  { %6670 = vrsqrt.f32 %v185_v55  ;;  %v6412_v55 = vpack.c.bf16 %v5310_v54, %v5309_v53 }
 0x241   :  { %v6669_v56 = vpop.eup %6668 }
 0x242   :  { %v188_v58 = vmul.f32 %v6669_v56, %v172_v24  ;;  %v6360_v24 = vpack.c.bf16 %v5264_v21, %v5263_v20  ;;  %v5253_v56 = vld [vmem:[%s7744_s5] ss:$0 sm:$0xff] }
 0x244   :  { %v194_v60 = vmul.f32 %v5231_v57, %v188_v58 }
 0x245   :  { %v6671_v61 = vpop.eup %6670 }
 0x246   :  { %v6964_v62 = vadd.f32 %v5232_v59, %v194_v60  ;;  %v189_v63 = vmul.f32 %v6671_v61, %v173_v28  ;;  %v5291_v28 = vld [vmem:[%s7743_s4 + $0x110] sm:$0xff] }
 0x247   :  { %v6388_v33 = vpack.c.bf16 %v5292_v29, %v5291_v28 }
 0x248   :  { %v195_v1 = vmul.f32 %v5231_v57, %v189_v63  ;;  %5825 = vmatprep.mubr.msk.f32.mxu1 %vm162_vm1, %v6964_v62  ;;  %5847 = vmatprep.mubr.msk.f32.mxu0 %vm162_vm1, %v6964_v62  ;;  %v5285_v63 = vld [vmem:[%s7744_s5 + $0x4] ss:$0 sm:$0xff] }
 0x24a   :  { %v6982_v5 = vadd.f32 %v5232_v59, %v195_v1 }
 0x24c   :  { %5826 = vmatmul.mubr.msk.f32.vlgmr.msra.gmra.mrb[0].mxu1 %vm162_vm1, %v6982_v5  ;;  %5848 = vmatmul.mubr.msk.f32.vlgmr.msra.gmra.mrb[2].mxu0 %vm162_vm1, %v6982_v5 }
 0x24d   :  { %6331 = vmatpush3.bf16.msra.mxu1 %v6328_v47  ;;  %6355 = vmatpush3.bf16.msra.mxu0 %v6352_v49  ;;  %v5297_v47 = vld [vmem:[%s7743_s4 + $0x130] sm:$0xff] }
 0x24e   :  { %5836 = vmatprep.mubr.msk.f32.mxu1 %vm162_vm1, %v6964_v62  ;;  %5869 = vmatprep.mubr.msk.f32.mxu0 %vm162_vm1, %v6964_v62  ;;  %v6396_v49 = vpack.c.bf16 %v5298_v48, %v5297_v47 }
 0x24f   :  { %6333 = vmatprep.subr.bf16.mxu1 %v6332_v7  ;;  %6357 = vmatprep.subr.bf16.mxu0 %v6356_v8 }
 0x251   :  { %6335 = vmatpush3.bf16.msra.mxu1 %v6332_v7  ;;  %6359 = vmatpush3.bf16.msra.mxu0 %v6356_v8 }
 0x252   :  { %6345 = vmatprep.subr.bf16.mxu1 %v6344_v12  ;;  %6369 = vmatprep.subr.bf16.mxu0 %v6368_v13 }
 0x254   :  { %5837 = vmatmul.mubr.msk.f32.vlgmr.msra.gmra.mrb[2].mxu1 %vm162_vm1, %v6982_v5  ;;  %5870 = vmatmul.mubr.msk.f32.vlgmr.msra.gmra.mrb[4].mxu0 %vm162_vm1, %v6982_v5 }
 0x255   :  { %6347 = vmatpush3.bf16.msra.mxu1 %v6344_v12  ;;  %5858 = vmatprep.mubr.msk.f32.mxu1 %vm162_vm1, %v6964_v62 }
 0x256   :  { %6371 = vmatpush3.bf16.msra.mxu0 %v6368_v13  ;;  %5891 = vmatprep.mubr.msk.f32.mxu0 %vm162_vm1, %v6964_v62 }
 0x257   :  { %6349 = vmatprep.subr.bf16.mxu1 %v6348_v18  ;;  %6373 = vmatprep.subr.bf16.mxu0 %v6372_v19 }
 0x259   :  { %6351 = vmatpush3.bf16.msra.mxu1 %v6348_v18 }
 0x25a   :  { %6375 = vmatpush3.bf16.msra.mxu0 %v6372_v19  ;;  %6361 = vmatprep.subr.bf16.mxu1 %v6360_v24 }
 0x25b   :  { %6385 = vmatprep.subr.bf16.mxu0 %v6384_v25 }
 0x25c   :  { %5859 = vmatmul.mubr.msk.f32.vlgmr.msra.gmra.mrb[4].mxu1 %vm162_vm1, %v6982_v5 }
 0x25d   :  { %5892 = vmatmul.mubr.msk.f32.vlgmr.msra.gmra.mrb[6].mxu0 %vm162_vm1, %v6982_v5  ;;  %6363 = vmatpush3.bf16.msra.mxu1 %v6360_v24 }
 0x25e   :  { %5880 = vmatprep.mubr.msk.f32.mxu1 %vm162_vm1, %v6964_v62  ;;  %6387 = vmatpush3.bf16.msra.mxu0 %v6384_v25 }
 0x25f   :  { %5913 = vmatprep.mubr.msk.f32.mxu0 %vm162_vm1, %v6964_v62  ;;  %6365 = vmatprep.subr.bf16.mxu1 %v6364_v30 }
 0x260   :  { %6389 = vmatprep.subr.bf16.mxu0 %v6388_v33 }
 0x261   :  { %6367 = vmatpush3.bf16.msra.mxu1 %v6364_v30 }
 0x262   :  { %6391 = vmatpush3.bf16.msra.mxu0 %v6388_v33  ;;  %6377 = vmatprep.subr.bf16.mxu1 %v6376_v36 }
 0x263   :  { %6401 = vmatprep.subr.bf16.mxu0 %v6400_v37 }
 0x264   :  { %5881 = vmatmul.mubr.msk.f32.vlgmr.msra.gmra.mrb[6].mxu1 %vm162_vm1, %v6982_v5 }
 0x265   :  { %5914 = vmatmul.mubr.msk.f32.vlgmr.msra.gmra.mrb[8].mxu0 %vm162_vm1, %v6982_v5  ;;  %6379 = vmatpush3.bf16.msra.mxu1 %v6376_v36  ;;  %v5319_v36 = vld [vmem:[%s7744_s5 + $0xa] ss:$0 sm:$0xff] }
 0x266   :  { %5902 = vmatprep.mubr.msk.f32.mxu1 %vm162_vm1, %v6964_v62  ;;  %6403 = vmatpush3.bf16.msra.mxu0 %v6400_v37 }
 0x267   :  { %5935 = vmatprep.mubr.msk.f32.mxu0 %vm162_vm1, %v6964_v62  ;;  %6381 = vmatprep.subr.bf16.mxu1 %v6380_v42 }
 0x268   :  { %6405 = vmatprep.subr.bf16.mxu0 %v6404_v45 }
 0x269   :  { %6383 = vmatpush3.bf16.msra.mxu1 %v6380_v42 }
 0x26a   :  { %6407 = vmatpush3.bf16.msra.mxu0 %v6404_v45  ;;  %6393 = vmatprep.subr.bf16.mxu1 %v6392_v46 }
 0x26c   :  { %5903 = vmatmul.mubr.msk.f32.vlgmr.msra.gmra.mrb[8].mxu1 %vm162_vm1, %v6982_v5 }
 0x26d   :  { %5936 = vmatmul.mubr.msk.f32.vlgmr.msra.gmra.mrb[10].mxu0 %vm162_vm1, %v6982_v5  ;;  %6395 = vmatpush3.bf16.msra.mxu1 %v6392_v46 }
 0x26e   :  { %5924 = vmatprep.mubr.msk.f32.mxu1 %vm162_vm1, %v6964_v62  ;;  %6397 = vmatprep.subr.bf16.mxu1 %v6396_v49 }
 0x271   :  { %6399 = vmatpush3.bf16.msra.mxu1 %v6396_v49 }
 0x272   :  { %6409 = vmatprep.subr.bf16.mxu1 %v6408_v52 }
 0x274   :  { %5925 = vmatmul.mubr.msk.f32.vlgmr.msra.gmra.mrb[10].mxu1 %vm162_vm1, %v6982_v5 }
 0x275   :  { %6411 = vmatpush3.bf16.msra.mxu1 %v6408_v52  ;;  %5946 = vmatprep.mubr.msk.f32.mxu1 %vm162_vm1, %v6964_v62 }
 0x276   :  { %6413 = vmatprep.subr.bf16.mxu1 %v6412_v55 }
 0x279   :  { %6415 = vmatpush3.bf16.msra.mxu1 %v6412_v55 }
 0x27c   :  { %5947 = vmatmul.mubr.msk.f32.vlgmr.msra.gmra.mrb[12].mxu1 %vm162_vm1, %v6982_v5 }
 0x31f   :  { %v5827_v57 = vpop.f32.mrb[0].mxu1  ;;  %v5849_v58 = vpop.f32.mrb[2].mxu0 }
 0x320   :  { %v286_v59 = vpop.f32.mrb[1].mxu1  ;;  %v446_v60 = vpop.f32.mrb[3].mxu0  ;;  %v564_v19 = vadd.f32 %v5827_v57, %v5253_v56  ;;  %v568_v33 = vadd.f32 %v5849_v58, %v5255_v15  ;;  %v5320_v57 = vld [vmem:[%s7744_s5 + $0xb] ss:$0 sm:$0xff] }
 0x321   :  { %v563_v61 = vadd.f32 %v5253_v56, %v286_v59  ;;  %v567_v20 = vadd.f32 %v5255_v15, %v446_v60 }
 0x323   :  { %5953 = vmatprep.mubr.msk.f32.mxu0 %vm1285_vm2, %v563_v61 }
 0x327   :  { %v5838_v1 = vpop.f32.mrb[2].mxu1  ;;  %v5871_v2 = vpop.f32.mrb[4].mxu0 }
 0x328   :  { %v921_v3 = vadd.f32 %v5871_v2, %v5285_v63  ;;  %v366_v4 = vpop.f32.mrb[3].mxu1  ;;  %v642_v6 = vpop.f32.mrb[5].mxu0  ;;  %v566_v47 = vadd.f32 %v5838_v1, %v5254_v0  ;;  %v202_v1 = vld [vmem:[%s7740_s1] sm:$0xff] }
 0x329   :  { %v565_v7 = vadd.f32 %v5254_v0, %v366_v4  ;;  %v920_v8 = vadd.f32 %v5285_v63, %v642_v6  ;;  %v203_v0 = vld [vmem:[%s7740_s1 + $0x8] sm:$0xff] }
 0x32b   :  { %v6416_v10 = vpack.c.bf16 %v921_v3, %v920_v8  ;;  %5960 = vmatprep.mubr.msk.f32.mxu1 %vm1285_vm2, %v565_v7 }
 0x32d   :  { %6418 = vmatprep.subr.msk.bf16.mxu0 %vm7136_vm3, %v6416_v10 }
 0x32e   :  { %6421 = vmatpush3.bf16.xpose.msk.msra.mxu0 %vm7136_vm3, %v6416_v10 }
 0x32f   :  { %v5860_v12 = vpop.f32.mrb[4].mxu1 }
 0x330   :  { %v5893_v13 = vpop.f32.mrb[6].mxu0  ;;  %v526_v14 = vpop.f32.mrb[5].mxu1  ;;  %v570_v56 = vadd.f32 %v5860_v12, %v5256_v44  ;;  %v205_v12 = vld [vmem:[%s7740_s1 + $0x18] sm:$0xff] }
 0x331   :  { %v925_v16 = vadd.f32 %v5893_v13, %v5287_v11  ;;  %v802_v17 = vpop.f32.mrb[7].mxu0  ;;  %v569_v49 = vadd.f32 %v5256_v44, %v526_v14  ;;  %v204_v13 = vld [vmem:[%s7740_s1 + $0x10] sm:$0xff]  ;;  %v207_v14 = vld [vmem:[%s7740_s1 + $0x28] sm:$0xff] }
 0x332   :  { %v924_v18 = vadd.f32 %v5287_v11, %v802_v17 }
 0x334   :  { %v6428_v21 = vpack.c.bf16 %v925_v16, %v924_v18  ;;  %v206_v16 = vld [vmem:[%s7740_s1 + $0x20] sm:$0xff] }
 0x335   :  { %5954 = vmatmul.mubr.msk.f32.vlgmr.msra.gmra.mrb[12].mxu0 %vm1285_vm2, %v564_v19 }
 0x336   :  { %6430 = vmatprep.subr.msk.bf16.mxu0 %vm7136_vm3, %v6428_v21  ;;  %5967 = vmatprep.mubr.msk.f32.mxu0 %vm1285_vm2, %v567_v20 }
 0x337   :  { %6433 = vmatpush3.bf16.xpose.msk.msra.mxu0 %vm7136_vm3, %v6428_v21  ;;  %v5882_v24 = vpop.f32.mrb[6].mxu1 }
 0x338   :  { %v923_v25 = vadd.f32 %v5882_v24, %v5286_v22  ;;  %v5915_v26 = vpop.f32.mrb[8].mxu0  ;;  %v722_v27 = vpop.f32.mrb[7].mxu1  ;;  %v209_v24 = vld [vmem:[%s7740_s1 + $0x38] sm:$0xff] }
 0x339   :  { %v1278_v28 = vadd.f32 %v5915_v26, %v5317_v23  ;;  %v922_v29 = vadd.f32 %v5286_v22, %v722_v27  ;;  %v999_v30 = vpop.f32.mrb[9].mxu0  ;;  %v208_v26 = vld [vmem:[%s7740_s1 + $0x30] sm:$0xff] }
 0x33a   :  { %v1277_v31 = vadd.f32 %v5317_v23, %v999_v30 }
 0x33b   :  { %v6422_v32 = vpack.c.bf16 %v923_v25, %v922_v29 }
 0x33c   :  { %v6440_v34 = vpack.c.bf16 %v1278_v28, %v1277_v31 }
 0x33d   :  { %6424 = vmatprep.subr.msk.bf16.mxu1 %vm7136_vm3, %v6422_v32 }
 0x33e   :  { %5968 = vmatmul.mubr.msk.f32.vlgmr.msra.gmra.mrb[14].mxu0 %vm1285_vm2, %v568_v33  ;;  %6441 = vmatprep.subr.bf16.mxu0 %v6440_v34 }
 0x33f   :  { %6427 = vmatpush3.bf16.xpose.msk.msra.mxu1 %vm7136_vm3, %v6422_v32  ;;  %6443 = vmatpush3.bf16.msra.mxu0 %v6440_v34  ;;  %v5904_v37 = vpop.f32.mrb[8].mxu1 }
 0x340   :  { %v927_v38 = vadd.f32 %v5904_v37, %v5288_v35  ;;  %v5937_v39 = vpop.f32.mrb[10].mxu0  ;;  %v882_v40 = vpop.f32.mrb[9].mxu1 }
 0x341   :  { %v1282_v41 = vadd.f32 %v5937_v39, %v5319_v36  ;;  %v926_v42 = vadd.f32 %v5288_v35, %v882_v40  ;;  %v1159_v43 = vpop.f32.mrb[11].mxu0 }
 0x342   :  { %v1281_v45 = vadd.f32 %v5319_v36, %v1159_v43 }
 0x343   :  { %v6434_v46 = vpack.c.bf16 %v927_v38, %v926_v42 }
 0x344   :  { %v7177_v48 = vpack.c.bf16 %v1282_v41, %v1281_v45 }
 0x345   :  { %6436 = vmatprep.subr.msk.bf16.mxu1 %vm7136_vm3, %v6434_v46 }
 0x346   :  { %5961 = vmatmul.mubr.msk.f32.vlgmr.msra.gmra.mrb[14].mxu1 %vm1285_vm2, %v566_v47  ;;  %6449 = vmatprep.subr.bf16.mxu0 %v7177_v48 }
 0x347   :  { %6439 = vmatpush3.bf16.xpose.msk.msra.mxu1 %vm7136_vm3, %v6434_v46  ;;  %5974 = vmatprep.mubr.msk.f32.mxu1 %vm1285_vm2, %v569_v49  ;;  %v5926_v51 = vpop.f32.mrb[10].mxu1 }
 0x348   :  { %v1280_v52 = vadd.f32 %v5926_v51, %v5318_v50  ;;  %v1079_v53 = vpop.f32.mrb[11].mxu1 }
 0x349   :  { %v1279_v54 = vadd.f32 %v5318_v50, %v1079_v53 }
 0x34b   :  { %v6444_v55 = vpack.c.bf16 %v1280_v52, %v1279_v54 }
 0x34d   :  { %6445 = vmatprep.subr.bf16.mxu1 %v6444_v55 }
 0x34e   :  { %5975 = vmatmul.mubr.msk.f32.vlgmr.msra.gmra.mrb[16].mxu1 %vm1285_vm2, %v570_v56 }
 0x34f   :  { %6447 = vmatpush3.bf16.msra.mxu1 %v6444_v55  ;;  %v5948_v58 = vpop.f32.mrb[12].mxu1 }
 0x350   :  { %v1284_v59 = vadd.f32 %v5948_v58, %v5320_v57  ;;  %v1239_v60 = vpop.f32.mrb[13].mxu1 }
 0x351   :  { %v1283_v61 = vadd.f32 %v5320_v57, %v1239_v60 }
 0x353   :  { %v7193_v63 = vpack.c.bf16 %v1284_v59, %v1283_v61 }
 0x355   :  { %6453 = vmatprep.subr.bf16.mxu1 %v7193_v63 }
 0x408   :  { %v5955_v2 = vpop.f32.mrb[12].mxu0 }
 0x409   :  { %v1370_v3 = vadd.f32 %v5955_v2, %v203_v0  ;;  %v1364_v4 = vpop.f32.mrb[13].mxu0 }
 0x40a   :  { %v1365_v6 = vadd.f32 %v1364_v4, %v202_v1 }
 0x40b   :  { %v1638_v7 = vsel %vm1634_vm4, %v1370_v3, -inf }
 0x40c   :  { %1639 = vmax.xlane.f32.xlu1 %v1638_v7  ;;  %v1635_v8 = vsel %vm1634_vm4, %v1365_v6, -inf }
 0x40d   :  { %1636 = vmax.xlane.f32.xlu0 %v1635_v8 }
 0x411   :  { %v5969_v10 = vpop.f32.mrb[14].mxu0 }
 0x412   :  { %v1538_v11 = vpop.f32.mrb[15].mxu0  ;;  %v1544_v20 = vadd.f32 %v5969_v10, %v207_v14 }
 0x413   :  { %v1539_v22 = vadd.f32 %v1538_v11, %v206_v16 }
 0x414   :  { %v1650_v25 = vsel %vm1634_vm4, %v1544_v20, -inf }
 0x415   :  { %v1647_v28 = vsel %vm1634_vm4, %v1539_v22, -inf }
 0x419   :  { %v5962_v15 = vpop.f32.mrb[14].mxu1 }
 0x41a   :  { %v1457_v17 = vadd.f32 %v5962_v15, %v205_v12  ;;  %v1451_v18 = vpop.f32.mrb[15].mxu1 }
 0x41b   :  { %v1452_v19 = vadd.f32 %v1451_v18, %v204_v13 }
 0x41c   :  { %v1644_v21 = vsel %vm1634_vm4, %v1457_v17, -inf }
 0x41d   :  { %1645 = vmax.xlane.f32.xlu1 %v1644_v21  ;;  %v1641_v23 = vsel %vm1634_vm4, %v1452_v19, -inf }
 0x41e   :  { %1642 = vmax.xlane.f32.xlu0 %v1641_v23 }
 0x421   :  { %1651 = vmax.xlane.f32.xlu1 %v1650_v25  ;;  %v5976_v27 = vpop.f32.mrb[16].mxu1 }
 0x422   :  { %v1631_v29 = vadd.f32 %v5976_v27, %v209_v24  ;;  %1648 = vmax.xlane.f32.xlu0 %v1647_v28  ;;  %v1625_v30 = vpop.f32.mrb[17].mxu1 }
 0x423   :  { %v1626_v31 = vadd.f32 %v1625_v30, %v208_v26 }
 0x424   :  { %v1656_v32 = vsel %vm1634_vm4, %v1631_v29, -inf }
 0x425   :  { %1657 = vmax.xlane.f32.xlu1 %v1656_v32  ;;  %v1653_v33 = vsel %vm1634_vm4, %v1626_v31, -inf }
 0x426   :  { %1654 = vmax.xlane.f32.xlu0 %v1653_v33 }
 0x499   :  { %v1640_v34 = vpop.xlane.xlu1 %1639 }
 0x49a   :  { %v1660_v35 = vsub.f32 %v1370_v3, %v1640_v34  ;;  %v1637_v36 = vpop.xlane.xlu0 %1636 }
 0x49b   :  { %v1659_v37 = vsub.f32 %v1365_v6, %v1637_v36 }
 0x49c   :  { %v1669_v38 = vmul.f32 1.442695, %v1660_v35 }
 0x49d   :  { %v1667_v39 = vmul.f32 1.442695, %v1659_v37 }
 0x49e   :  { %6672 = vpow2.f32 %v1669_v38  ;;  %v2048_v38 = vld [vmem:[#allocation4] sm:$0xff] }
 0x49f   :  { %6674 = vpow2.f32 %v1667_v39  ;;  %v2137_v39 = vld [vmem:[#allocation4 + $0x8] sm:$0xff] }
 0x4a8   :  { %v6673_v40 = vpop.eup %6672 }
 0x4a9   :  { %v6675_v41 = vpop.eup %6674  ;;  %v1686_v42 = vsel %vm1634_vm4, %v6673_v40, 0.0 }
 0x4aa   :  { %v1646_v43 = vpop.xlane.xlu1 %1645  ;;  %1687 = vadd.xlane.f32.xlu1 %v1686_v42  ;;  %v1683_v44 = vsel %vm1634_vm4, %v6675_v41, 0.0 }
 0x4ab   :  { %v1662_v45 = vsub.f32 %v1457_v17, %v1646_v43  ;;  %v1643_v46 = vpop.xlane.xlu0 %1642  ;;  %1684 = vadd.xlane.f32.xlu0 %v1683_v44  ;;  %v2307_v44 = vld [vmem:[#allocation4 + $0x18] sm:$0xff] }
 0x4ac   :  { %v1661_v47 = vsub.f32 %v1452_v19, %v1643_v46 }
 0x4ad   :  { %v1673_v49 = vmul.f32 1.442695, %v1662_v45 }
 0x4ae   :  { %v1671_v50 = vmul.f32 1.442695, %v1661_v47  ;;  %v1652_v51 = vpop.xlane.xlu1 %1651 }
 0x4af   :  { %6676 = vpow2.f32 %v1673_v49  ;;  %v1664_v52 = vsub.f32 %v1544_v20, %v1652_v51  ;;  %v1649_v53 = vpop.xlane.xlu0 %1648 }
 0x4b0   :  { %6678 = vpow2.f32 %v1671_v50  ;;  %v1663_v54 = vsub.f32 %v1539_v22, %v1649_v53  ;;  %v5347_v50 = vld [vmem:[%s7749_s10 + $0x2] ss:$0 sm:$0xff] }
 0x4b1   :  { %v1677_v55 = vmul.f32 1.442695, %v1664_v52 }
 0x4b2   :  { %v1675_v56 = vmul.f32 1.442695, %v1663_v54  ;;  %v1658_v57 = vpop.xlane.xlu1 %1657 }
 0x4b3   :  { %6680 = vpow2.f32 %v1677_v55  ;;  %v1666_v58 = vsub.f32 %v1631_v29, %v1658_v57  ;;  %v1655_v59 = vpop.xlane.xlu0 %1654 }
 0x4b4   :  { %6682 = vpow2.f32 %v1675_v56  ;;  %v1665_v60 = vsub.f32 %v1626_v31, %v1655_v59 }
 0x4b5   :  { %v1681_v61 = vmul.f32 1.442695, %v1666_v58 }
 0x4b6   :  { %v1679_v0 = vmul.f32 1.442695, %v1665_v60 }
 0x4b7   :  { %6684 = vpow2.f32 %v1681_v61 }
 0x4b8   :  { %6686 = vpow2.f32 %v1679_v0 }
 0x4b9   :  { %v6677_v1 = vpop.eup %6676 }
 0x4ba   :  { %v6679_v2 = vpop.eup %6678  ;;  %v1692_v3 = vsel %vm1634_vm4, %v6677_v1, 0.0 }
 0x4bb   :  { %1693 = vadd.xlane.f32.xlu1 %v1692_v3  ;;  %v1689_v4 = vsel %vm1634_vm4, %v6679_v2, 0.0 }
 0x4bc   :  { %1690 = vadd.xlane.f32.xlu0 %v1689_v4 }
 0x4bd   :  { %v6681_v6 = vpop.eup %6680 }
 0x4be   :  { %v6683_v7 = vpop.eup %6682  ;;  %v1698_v8 = vsel %vm1634_vm4, %v6681_v6, 0.0 }
 0x4bf   :  { %1699 = vadd.xlane.f32.xlu1 %v1698_v8  ;;  %v1695_v10 = vsel %vm1634_vm4, %v6683_v7, 0.0 }
 0x4c0   :  { %1696 = vadd.xlane.f32.xlu0 %v1695_v10  ;;  %v2435_v10 = vld [vmem:[%s7746_s7 + $0x10] sm:$0xff] }
 0x4c1   :  { %v6685_v11 = vpop.eup %6684 }
 0x4c2   :  { %v6687_v12 = vpop.eup %6686  ;;  %v1704_v13 = vsel %vm1634_vm4, %v6685_v11, 0.0 }
 0x4c3   :  { %1705 = vadd.xlane.f32.xlu1 %v1704_v13  ;;  %v1701_v14 = vsel %vm1634_vm4, %v6687_v12, 0.0 }
 0x4c4   :  { %1702 = vadd.xlane.f32.xlu0 %v1701_v14 }
 0x537   :  { %v1688_v15 = vpop.xlane.xlu1 %1687 }
 0x538   :  { %6688 = vrcp.f32 %v1688_v15  ;;  %v1685_v16 = vpop.xlane.xlu0 %1684 }
 0x539   :  { %6690 = vrcp.f32 %v1685_v16 }
 0x542   :  { %v6689_v17 = vpop.eup %6688 }
 0x543   :  { %v6691_v18 = vpop.eup %6690  ;;  %v1716_v20 = vmul.f32 %v6689_v17, %v6673_v40 }
 0x544   :  { %v1715_v19 = vmul.f32 %v6691_v18, %v6675_v41  ;;  %v2222_v41 = vld [vmem:[#allocation4 + $0x10] sm:$0xff] }
 0x546   :  { %5981 = vmatprep.mubr.msk.f32.mxu0 %vm1634_vm4, %v1715_v19 }
 0x547   :  { %5982 = vmatmul.mubr.msk.f32.vlgmr.msra.gmra.mrb[16].mxu0 %vm1634_vm4, %v1716_v20  ;;  %v5354_v20 = vld [vmem:[%s7749_s10 + $0x3] ss:$0 sm:$0xff] }
 0x548   :  { %v1694_v21 = vpop.xlane.xlu1 %1693  ;;  %6451 = vmatpush3.bf16.msra.mxu0 %v7177_v48 }
 0x549   :  { %6692 = vrcp.f32 %v1694_v21  ;;  %v1691_v22 = vpop.xlane.xlu0 %1690  ;;  %6005 = vmatprep.subr.mxu0 %v2048_v38 }
 0x54a   :  { %6694 = vrcp.f32 %v1691_v22 }
 0x54c   :  { %v1700_v23 = vpop.xlane.xlu1 %1699 }
 0x54d   :  { %6696 = vrcp.f32 %v1700_v23  ;;  %v1697_v24 = vpop.xlane.xlu0 %1696 }
 0x54e   :  { %6698 = vrcp.f32 %v1697_v24  ;;  %v5355_v24 = vld [vmem:[%s7749_s10 + $0x4] ss:$0 sm:$0xff] }
 0x550   :  { %v1706_v25 = vpop.xlane.xlu1 %1705 }
 0x551   :  { %6700 = vrcp.f32 %v1706_v25  ;;  %v1703_v26 = vpop.xlane.xlu0 %1702 }
 0x552   :  { %6702 = vrcp.f32 %v1703_v26 }
 0x553   :  { %v6693_v27 = vpop.eup %6692 }
 0x554   :  { %v6695_v28 = vpop.eup %6694  ;;  %v1718_v30 = vmul.f32 %v6693_v27, %v6677_v1 }
 0x555   :  { %v1717_v29 = vmul.f32 %v6695_v28, %v6679_v2 }
 0x557   :  { %v6697_v31 = vpop.eup %6696  ;;  %5988 = vmatprep.mubr.msk.f32.mxu1 %vm1634_vm4, %v1717_v29  ;;  %v2533_v29 = vld [vmem:[%s7747_s8] sm:$0xff] }
 0x558   :  { %v6699_v32 = vpop.eup %6698  ;;  %5989 = vmatmul.mubr.msk.f32.vlgmr.msra.gmra.mrb[18].mxu1 %vm1634_vm4, %v1718_v30  ;;  %v1720_v33 = vmul.f32 %v6697_v31, %v6681_v6  ;;  %v2534_v30 = vld [vmem:[%s7747_s8 + $0x8] sm:$0xff] }
 0x559   :  { %6455 = vmatpush3.bf16.msra.mxu1 %v7193_v63  ;;  %v1719_v48 = vmul.f32 %v6699_v32, %v6683_v7  ;;  %v2434_v7 = vld [vmem:[%s7746_s7 + $0x8] sm:$0xff]  ;;  %v6464_v31 = vpack.c.bf16 %v2534_v30, %v2533_v29  ;;  %v2535_v32 = vld [vmem:[%s7747_s8 + $0x10] sm:$0xff] }
 0x55b   :  { %v6701_v34 = vpop.eup %6700  ;;  %5995 = vmatprep.mubr.msk.f32.mxu0 %vm1634_vm4, %v1719_v48  ;;  %v2536_v48 = vld [vmem:[%s7747_s8 + $0x18] sm:$0xff] }
 0x55c   :  { %v6703_v35 = vpop.eup %6702  ;;  %5996 = vmatmul.mubr.msk.f32.vlgmr.msra.gmra.mrb[18].mxu0 %vm1634_vm4, %v1720_v33  ;;  %v1722_v37 = vmul.f32 %v6701_v34, %v6685_v11  ;;  %v2436_v11 = vld [vmem:[%s7746_s7 + $0x18] sm:$0xff]  ;;  %v6468_v33 = vpack.c.bf16 %v2536_v48, %v2535_v32  ;;  %v2537_v34 = vld [vmem:[%s7747_s8 + $0x20] sm:$0xff] }
 0x55d   :  { %v1721_v36 = vmul.f32 %v6703_v35, %v6687_v12  ;;  %6006 = vmatpush3.msra.mxu0 %v2048_v38  ;;  %v6460_v12 = vpack.c.bf16 %v2436_v11, %v2435_v10  ;;  %v2538_v35 = vld [vmem:[%s7747_s8 + $0x28] sm:$0xff]  ;;  %v2540_v38 = vld [vmem:[%s7747_s8 + $0x38] sm:$0xff] }
 0x55e   :  { %6010 = vmatprep.subr.mxu0 %v2137_v39 }
 0x55f   :  { %6002 = vmatprep.mubr.msk.f32.mxu1 %vm1634_vm4, %v1721_v36  ;;  %v6472_v36 = vpack.c.bf16 %v2538_v35, %v2537_v34 }
 0x560   :  { %6003 = vmatmul.mubr.msk.f32.vlgmr.msra.gmra.mrb[20].mxu1 %vm1634_vm4, %v1722_v37  ;;  %v2539_v37 = vld [vmem:[%s7747_s8 + $0x30] sm:$0xff] }
 0x61a   :  { %v5983_v63 = vpop.f32.mrb[16].mxu0 }
 0x61b   :  { %v1795_v40 = vpop.f32.mrb[17].mxu0 }
 0x61c   :  { %6007 = vmatprep.mubr.msk.f32.mxu0 %vm1285_vm2, %v1795_v40 }
 0x61d   :  { %6008 = vmatmul.mubr.msk.f32.vlgmr.msra.gmra.mrb[20].mxu0 %vm1285_vm2, %v5983_v63  ;;  %v5356_v63 = vld [vmem:[%s7749_s10 + $0x5] ss:$0 sm:$0xff] }
 0x61e   :  { %6011 = vmatpush3.msra.mxu0 %v2137_v39  ;;  %v6476_v39 = vpack.c.bf16 %v2540_v38, %v2539_v37 }
 0x61f   :  { %6015 = vmatprep.subr.mxu0 %v2222_v41 }
 0x62b   :  { %v5990_v42 = vpop.f32.mrb[18].mxu1 }
 0x62c   :  { %v1876_v43 = vpop.f32.mrb[19].mxu1 }
 0x62d   :  { %6012 = vmatprep.mubr.msk.f32.mxu0 %vm1285_vm2, %v1876_v43 }
 0x62e   :  { %6013 = vmatmul.mubr.msk.f32.vlgmr.msra.gmra.mrb[20].mxu0 %vm1285_vm2, %v5990_v42 }
 0x62f   :  { %6016 = vmatpush3.msra.mxu0 %v2222_v41  ;;  %v5997_v45 = vpop.f32.mrb[18].mxu0 }
 0x630   :  { %v1957_v46 = vpop.f32.mrb[19].mxu0  ;;  %6020 = vmatprep.subr.mxu0 %v2307_v44 }
 0x631   :  { %6017 = vmatprep.mubr.msk.f32.mxu0 %vm1285_vm2, %v1957_v46 }
 0x633   :  { %v6004_v47 = vpop.f32.mrb[20].mxu1 }
 0x634   :  { %v2038_v49 = vpop.f32.mrb[21].mxu1 }
 0x636   :  { %6018 = vmatmul.mubr.msk.f32.vlgmr.msra.gmra.mrb[20].mxu0 %vm1285_vm2, %v5997_v45 }
 0x637   :  { %6021 = vmatpush3.msra.mxu0 %v2307_v44  ;;  %6022 = vmatprep.mubr.msk.f32.mxu0 %vm1285_vm2, %v2038_v49 }
 0x63e   :  { %6023 = vmatmul.mubr.msk.f32.vlgmr.msra.gmra.mrb[20].mxu0 %vm1285_vm2, %v6004_v47 }
 0x711   :  { %v6024_v51 = vpop.f32.mrb[20].mxu0 }
 0x712   :  { %v6648_v52 = vadd.f32 %v6024_v51, %v5347_v50  ;;  %v2380_v53 = vpop.f32.mrb[21].mxu0 }
 0x713   :  { %v6649_v54 = vadd.f32 %v5347_v50, %v2380_v53 }
 0x714   :  { %v2392_v55 = vadd.f32 %v6648_v52, %v6982_v5 }
 0x715   :  { %v2391_v56 = vadd.f32 %v6649_v54, %v6964_v62  ;;  %v2433_v62 = vld [vmem:[%s7746_s7] sm:$0xff] }
 0x716   :  { %v2398_v57 = vsel %vm162_vm1, %v2392_v55, 0.0  ;;  %v6456_v8 = vpack.c.bf16 %v2434_v7, %v2433_v62 }
 0x717   :  { %2399 = vadd.xlane.f32.xlu1 %v2398_v57  ;;  %v2395_v58 = vsel %vm162_vm1, %v2391_v56, 0.0 }
 0x718   :  { %2396 = vadd.xlane.f32.xlu0 %v2395_v58  ;;  %6457 = vmatprep.subr.bf16.mxu1 %v6456_v8 }
 0x719   :  { %6459 = vmatpush3.bf16.msra.mxu1 %v6456_v8 }
 0x71a   :  { %6461 = vmatprep.subr.bf16.mxu1 %v6460_v12 }
 0x71d   :  { %6463 = vmatpush3.bf16.msra.mxu1 %v6460_v12  ;;  %v5364_v12 = vld [vmem:[%s7743_s4 + $0x180] sm:$0xff] }
 0x71e   :  { %6465 = vmatprep.subr.bf16.mxu1 %v6464_v31 }
 0x7a4   :  { %v2400_v59 = vpop.xlane.xlu1 %2399 }
 0x7a5   :  { %v2402_v60 = vmul.f32 0.03125, %v2400_v59  ;;  %v2397_v61 = vpop.xlane.xlu0 %2396 }
 0x7a6   :  { %v2401_v0 = vmul.f32 0.03125, %v2397_v61 }
 0x7a7   :  { %v2404_v1 = vsub.f32 %v2392_v55, %v2402_v60  ;;  %v5359_v55 = vld [vmem:[%s7749_s10 + $0x6] ss:$0 sm:$0xff] }
 0x7a8   :  { %v2403_v2 = vsub.f32 %v2391_v56, %v2401_v0 }
 0x7a9   :  { %v2406_v3 = vmul.f32 %v2404_v1, %v2404_v1 }
 0x7aa   :  { %v2405_v4 = vmul.f32 %v2403_v2, %v2403_v2 }
 0x7ab   :  { %v2410_v6 = vsel %vm162_vm1, %v2406_v3, 0.0 }
 0x7ac   :  { %2411 = vadd.xlane.f32.xlu1 %v2410_v6  ;;  %v2407_v5 = vsel %vm162_vm1, %v2405_v4, 0.0 }
 0x7ad   :  { %2408 = vadd.xlane.f32.xlu0 %v2407_v5 }
 0x839   :  { %v2412_v13 = vpop.xlane.xlu1 %2411 }
 0x83a   :  { %v2414_v14 = vmul.f32 0.03125, %v2412_v13  ;;  %v2409_v15 = vpop.xlane.xlu0 %2408  ;;  %v5365_v13 = vld [vmem:[%s7743_s4 + $0x188] sm:$0xff] }
 0x83b   :  { %v2413_v16 = vmul.f32 0.03125, %v2409_v15  ;;  %v6480_v15 = vpack.c.bf16 %v5365_v13, %v5364_v12  ;;  %v5414_v12 = vld [vmem:[%s7743_s4 + $0x260] sm:$0xff]  ;;  %v5415_v13 = vld [vmem:[%s7743_s4 + $0x268] sm:$0xff] }
 0x83c   :  { %v2416_v17 = vadd.f32 1e-12, %v2414_v14  ;;  %v5376_v14 = vld [vmem:[%s7743_s4 + $0x1c0] sm:$0xff] }
 0x83d   :  { %v2415_v18 = vadd.f32 1e-12, %v2413_v16  ;;  %v5377_v16 = vld [vmem:[%s7743_s4 + $0x1c8] sm:$0xff]  ;;  %6481 = vmatprep.subr.bf16.mxu0 %v6480_v15 }
 0x83e   :  { %6704 = vrsqrt.f32 %v2416_v17  ;;  %v6496_v17 = vpack.c.bf16 %v5377_v16, %v5376_v14  ;;  %6483 = vmatpush3.bf16.msra.mxu0 %v6480_v15  ;;  %v5440_v15 = vld [vmem:[%s7743_s4 + $0x2c0] sm:$0xff]  ;;  %v5441_v16 = vld [vmem:[%s7743_s4 + $0x2c8] sm:$0xff] }
 0x83f   :  { %6706 = vrsqrt.f32 %v2415_v18  ;;  %v5366_v18 = vld [vmem:[%s7743_s4 + $0x190] sm:$0xff] }
 0x848   :  { %v6705_v19 = vpop.eup %6704 }
 0x849   :  { %v6707_v21 = vpop.eup %6706  ;;  %v2420_v22 = vmul.f32 %v6705_v19, %v2404_v1  ;;  %v5367_v19 = vld [vmem:[%s7743_s4 + $0x198] sm:$0xff] }
 0x84a   :  { %v2419_v23 = vmul.f32 %v6707_v21, %v2403_v2  ;;  %v6484_v21 = vpack.c.bf16 %v5367_v19, %v5366_v18  ;;  %v6560_v18 = vpack.c.bf16 %v5441_v16, %v5440_v15  ;;  %v5416_v19 = vld [vmem:[%s7743_s4 + $0x270] sm:$0xff] }
 0x84b   :  { %v2426_v25 = vmul.f32 %v5354_v20, %v2420_v22  ;;  %v5379_v22 = vld [vmem:[%s7743_s4 + $0x1d8] sm:$0xff]  ;;  %v5427_v16 = vld [vmem:[%s7744_s5 + $0x13] ss:$0 sm:$0xff] }
 0x84c   :  { %v2425_v26 = vmul.f32 %v5354_v20, %v2419_v23  ;;  %v5378_v20 = vld [vmem:[%s7743_s4 + $0x1d0] sm:$0xff]  ;;  %6485 = vmatprep.subr.bf16.mxu0 %v6484_v21 }
 0x84d   :  { %v2432_v28 = vadd.f32 %v5355_v24, %v2426_v25  ;;  %v6500_v23 = vpack.c.bf16 %v5379_v22, %v5378_v20  ;;  %6487 = vmatpush3.bf16.msra.mxu0 %v6484_v21  ;;  %v5371_v25 = vld [vmem:[%s7743_s4 + $0x1a8] sm:$0xff]  ;;  %v5417_v20 = vld [vmem:[%s7743_s4 + $0x278] sm:$0xff]  ;;  %v5442_v21 = vld [vmem:[%s7743_s4 + $0x2d0] sm:$0xff] }
 0x84e   :  { %v2431_v27 = vadd.f32 %v5355_v24, %v2425_v26  ;;  %v5370_v24 = vld [vmem:[%s7743_s4 + $0x1a0] sm:$0xff]  ;;  %v5443_v22 = vld [vmem:[%s7743_s4 + $0x2d8] sm:$0xff] }
 0x84f   :  { %v5396_v26 = vld [vmem:[%s7743_s4 + $0x200] sm:$0xff] }
 0x850   :  { %6033 = vmatprep.mubr.msk.f32.mxu1 %vm162_vm1, %v2431_v27 }
 0x851   :  { %6034 = vmatmul.mubr.msk.f32.vlgmr.msra.gmra.mrb[22].mxu1 %vm162_vm1, %v2432_v28 }
 0x852   :  { %6467 = vmatpush3.bf16.msra.mxu1 %v6464_v31 }
 0x853   :  { %6469 = vmatprep.subr.bf16.mxu1 %v6468_v33 }
 0x856   :  { %6471 = vmatpush3.bf16.msra.mxu1 %v6468_v33 }
 0x857   :  { %6473 = vmatprep.subr.bf16.mxu1 %v6472_v36 }
 0x85a   :  { %6475 = vmatpush3.bf16.msra.mxu1 %v6472_v36  ;;  %v5362_v36 = vld [vmem:[%s7749_s10 + $0x7] ss:$0 sm:$0xff] }
 0x85b   :  { %6477 = vmatprep.subr.bf16.mxu1 %v6476_v39 }
 0x85e   :  { %6479 = vmatpush3.bf16.msra.mxu1 %v6476_v39 }
 0x85f   :  { %6497 = vmatprep.subr.bf16.mxu1 %v6496_v17 }
 0x924   :  { %v6035_v40 = vpop.f32.mrb[22].mxu1 }
 0x925   :  { %v2520_v41 = vadd.f32 %v6035_v40, %v5356_v63  ;;  %v2514_v42 = vpop.f32.mrb[23].mxu1 }
 0x926   :  { %v2515_v43 = vadd.f32 %v5356_v63, %v2514_v42  ;;  %v5363_v63 = vld [vmem:[%s7749_s10 + $0x8] ss:$0 sm:$0xff]  ;;  %v5372_v42 = vld [vmem:[%s7743_s4 + $0x1b0] sm:$0xff] }
 0x927   :  { %v2526_v44 = vmul.f32 0.70710677, %v2520_v41  ;;  %v2524_v52 = vmul.f32 0.5, %v2520_v41 }
 0x928   :  { %v2525_v45 = vmul.f32 0.70710677, %v2515_v43  ;;  %v2523_v50 = vmul.f32 0.5, %v2515_v43  ;;  %v5373_v43 = vld [vmem:[%s7743_s4 + $0x1b8] sm:$0xff] }
 0x929   :  { %6708 = verf.f32 %v2526_v44  ;;  %v5398_v44 = vld [vmem:[%s7743_s4 + $0x210] sm:$0xff] }
 0x92a   :  { %6710 = verf.f32 %v2525_v45  ;;  %v5399_v45 = vld [vmem:[%s7743_s4 + $0x218] sm:$0xff] }
 0x933   :  { %v6709_v46 = vpop.eup %6708 }
 0x934   :  { %v6711_v47 = vpop.eup %6710  ;;  %v2530_v49 = vadd.f32 1.0, %v6709_v46 }
 0x935   :  { %v2529_v51 = vadd.f32 1.0, %v6711_v47 }
 0x936   :  { %v2532_v54 = vmul.f32 %v2530_v49, %v2524_v52  ;;  %v5382_v49 = vld [vmem:[%s7743_s4 + $0x1e0] sm:$0xff]  ;;  %v5383_v52 = vld [vmem:[%s7743_s4 + $0x1e8] sm:$0xff] }
 0x937   :  { %v2531_v53 = vmul.f32 %v2529_v51, %v2523_v50  ;;  %v6492_v50 = vpack.c.bf16 %v5373_v43, %v5372_v42  ;;  %v6516_v51 = vpack.c.bf16 %v5399_v45, %v5398_v44  ;;  %v5393_v42 = vld [vmem:[%s7744_s5 + $0xd] ss:$0 sm:$0xff] }
 0x939   :  { %6052 = vmatprep.mubr.msk.f32.mxu1 %vm78_vm0, %v2531_v53  ;;  %v5408_v53 = vld [vmem:[%s7743_s4 + $0x240] sm:$0xff] }
 0x93a   :  { %6053 = vmatmul.mubr.msk.f32.vlgmr.msra.gmra.mrb[24].mxu1 %vm78_vm0, %v2532_v54  ;;  %v5409_v54 = vld [vmem:[%s7743_s4 + $0x248] sm:$0xff] }
 0x93b   :  { %6499 = vmatpush3.bf16.msra.mxu1 %v6496_v17  ;;  %v6536_v17 = vpack.c.bf16 %v5415_v13, %v5414_v12 }
 0x93c   :  { %6501 = vmatprep.subr.bf16.mxu1 %v6500_v23 }
 0x93f   :  { %6503 = vmatpush3.bf16.msra.mxu1 %v6500_v23  ;;  %v6540_v23 = vpack.c.bf16 %v5417_v20, %v5416_v19 }
 0xa0d   :  { %v6054_v56 = vpop.f32.mrb[24].mxu1 }
 0xa0e   :  { %v2624_v57 = vadd.f32 %v6054_v56, %v5359_v55  ;;  %v2618_v58 = vpop.f32.mrb[25].mxu1  ;;  %v6528_v56 = vpack.c.bf16 %v5409_v54, %v5408_v53  ;;  %v5426_v54 = vld [vmem:[%s7744_s5 + $0x12] ss:$0 sm:$0xff] }
 0xa0f   :  { %v2619_v59 = vadd.f32 %v5359_v55, %v2618_v58  ;;  %v6504_v55 = vpack.c.bf16 %v5383_v52, %v5382_v49  ;;  %v5385_v58 = vld [vmem:[%s7743_s4 + $0x1f8] sm:$0xff] }
 0xa10   :  { %v2628_v60 = vadd.f32 %v2624_v57, %v2432_v28  ;;  %v5397_v28 = vld [vmem:[%s7743_s4 + $0x208] sm:$0xff]  ;;  %v5384_v57 = vld [vmem:[%s7743_s4 + $0x1f0] sm:$0xff] }
 0xa11   :  { %v2627_v61 = vadd.f32 %v2619_v59, %v2431_v27  ;;  %v6488_v27 = vpack.c.bf16 %v5371_v25, %v5370_v24  ;;  %v6512_v29 = vpack.c.bf16 %v5397_v28, %v5396_v26  ;;  %v5410_v59 = vld [vmem:[%s7743_s4 + $0x250] sm:$0xff]  ;;  %v5434_v24 = vld [vmem:[%s7743_s4 + $0x2a0] sm:$0xff]  ;;  %v5435_v25 = vld [vmem:[%s7743_s4 + $0x2a8] sm:$0xff]  ;;  %v6564_v26 = vpack.c.bf16 %v5443_v22, %v5442_v21 }
 0xa12   :  { %v2634_v0 = vsel %vm162_vm1, %v2628_v60, 0.0  ;;  %v5436_v28 = vld [vmem:[%s7743_s4 + $0x2b0] sm:$0xff] }
 0xa13   :  { %2635 = vadd.xlane.f32.xlu1 %v2634_v0  ;;  %v2631_v1 = vsel %vm162_vm1, %v2627_v61, 0.0  ;;  %6489 = vmatprep.subr.bf16.mxu0 %v6488_v27 }
 0xa14   :  { %2632 = vadd.xlane.f32.xlu0 %v2631_v1  ;;  %6513 = vmatprep.subr.bf16.mxu1 %v6512_v29  ;;  %v5402_v1 = vld [vmem:[%s7743_s4 + $0x220] sm:$0xff] }
 0xaa0   :  { %v2636_v2 = vpop.xlane.xlu1 %2635 }
 0xaa1   :  { %v2638_v3 = vmul.f32 0.03125, %v2636_v2  ;;  %v2633_v4 = vpop.xlane.xlu0 %2632  ;;  %v5403_v2 = vld [vmem:[%s7743_s4 + $0x228] sm:$0xff] }
 0xaa2   :  { %v2637_v6 = vmul.f32 0.03125, %v2633_v4  ;;  %v5429_v4 = vld [vmem:[%s7743_s4 + $0x288] sm:$0xff] }
 0xaa3   :  { %v2640_v5 = vsub.f32 %v2628_v60, %v2638_v3  ;;  %v5411_v60 = vld [vmem:[%s7743_s4 + $0x258] sm:$0xff]  ;;  %v5428_v3 = vld [vmem:[%s7743_s4 + $0x280] sm:$0xff] }
 0xaa4   :  { %v2639_v62 = vsub.f32 %v2627_v61, %v2637_v6  ;;  %v6508_v61 = vpack.c.bf16 %v5385_v58, %v5384_v57  ;;  %v6532_v0 = vpack.c.bf16 %v5411_v60, %v5410_v59  ;;  %v6520_v6 = vpack.c.bf16 %v5403_v2, %v5402_v1  ;;  %v5394_v58 = vld [vmem:[%s7744_s5 + $0xe] ss:$0 sm:$0xff] }
 0xaa5   :  { %v2642_v7 = vmul.f32 %v2640_v5, %v2640_v5 }
 0xaa6   :  { %v2641_v8 = vmul.f32 %v2639_v62, %v2639_v62 }
 0xaa7   :  { %v2646_v10 = vsel %vm162_vm1, %v2642_v7, 0.0  ;;  %v5405_v7 = vld [vmem:[%s7743_s4 + $0x238] sm:$0xff] }
 0xaa8   :  { %2647 = vadd.xlane.f32.xlu1 %v2646_v10  ;;  %v2643_v11 = vsel %vm162_vm1, %v2641_v8, 0.0  ;;  %v5430_v8 = vld [vmem:[%s7743_s4 + $0x290] sm:$0xff]  ;;  %v5431_v10 = vld [vmem:[%s7743_s4 + $0x298] sm:$0xff] }
 0xaa9   :  { %2644 = vadd.xlane.f32.xlu0 %v2643_v11  ;;  %v6548_v14 = vpack.c.bf16 %v5431_v10, %v5430_v8 }
 0xb35   :  { %v2648_v30 = vpop.xlane.xlu1 %2647 }
 0xb36   :  { %v2650_v31 = vmul.f32 0.03125, %v2648_v30  ;;  %v2645_v32 = vpop.xlane.xlu0 %2644 }
 0xb37   :  { %v2649_v48 = vmul.f32 0.03125, %v2645_v32  ;;  %v5447_v32 = vld [vmem:[%s7743_s4 + $0x2e8] sm:$0xff] }
 0xb38   :  { %v2652_v33 = vadd.f32 1e-12, %v2650_v31  ;;  %v5446_v31 = vld [vmem:[%s7743_s4 + $0x2e0] sm:$0xff] }
 0xb39   :  { %v2651_v34 = vadd.f32 1e-12, %v2649_v48  ;;  %v6568_v48 = vpack.c.bf16 %v5447_v32, %v5446_v31  ;;  %v5457_v31 = vld [vmem:[%s7744_s5 + $0x15] ss:$0 sm:$0xff] }
 0xb3a   :  { %6712 = vrsqrt.f32 %v2652_v33  ;;  %v5448_v33 = vld [vmem:[%s7743_s4 + $0x2f0] sm:$0xff] }
 0xb3b   :  { %6714 = vrsqrt.f32 %v2651_v34  ;;  %v5449_v34 = vld [vmem:[%s7743_s4 + $0x2f8] sm:$0xff] }
 0xb44   :  { %v6713_v35 = vpop.eup %6712 }
 0xb45   :  { %v6715_v37 = vpop.eup %6714  ;;  %v2656_v38 = vmul.f32 %v6713_v35, %v2640_v5  ;;  %v6544_v5 = vpack.c.bf16 %v5429_v4, %v5428_v3  ;;  %v6572_v35 = vpack.c.bf16 %v5449_v34, %v5448_v33  ;;  %v5425_v3 = vld [vmem:[%s7744_s5 + $0x11] ss:$0 sm:$0xff]  ;;  %v5456_v4 = vld [vmem:[%s7744_s5 + $0x14] ss:$0 sm:$0xff] }
 0xb46   :  { %v2655_v39 = vmul.f32 %v6715_v37, %v2639_v62  ;;  %v5404_v62 = vld [vmem:[%s7743_s4 + $0x230] sm:$0xff] }
 0xb47   :  { %v2662_v40 = vmul.f32 %v5362_v36, %v2656_v38  ;;  %v6524_v11 = vpack.c.bf16 %v5405_v7, %v5404_v62 }
 0xb48   :  { %v2661_v41 = vmul.f32 %v5362_v36, %v2655_v39  ;;  %v5392_v36 = vld [vmem:[%s7744_s5 + $0xc] ss:$0 sm:$0xff] }
 0xb49   :  { %v7375_v47 = vadd.f32 %v5363_v63, %v2662_v40 }
 0xb4a   :  { %v7373_v46 = vadd.f32 %v5363_v63, %v2661_v41  ;;  %v5424_v41 = vld [vmem:[%s7744_s5 + $0x10] ss:$0 sm:$0xff] }
 0xb4c   :  { %6063 = vmatprep.mubr.msk.f32.mxu0 %vm162_vm1, %v7373_v46  ;;  %6085 = vmatprep.mubr.msk.f32.mxu1 %vm162_vm1, %v7373_v46 }
 0xb4d   :  { %6064 = vmatmul.mubr.msk.f32.vlgmr.msra.gmra.mrb[22].mxu0 %vm162_vm1, %v7375_v47  ;;  %6086 = vmatmul.mubr.msk.f32.vlgmr.msra.gmra.mrb[26].mxu1 %vm162_vm1, %v7375_v47 }
 0xb4e   :  { %6491 = vmatpush3.bf16.msra.mxu0 %v6488_v27  ;;  %6515 = vmatpush3.bf16.msra.mxu1 %v6512_v29  ;;  %v6552_v27 = vpack.c.bf16 %v5435_v25, %v5434_v24  ;;  %v5437_v29 = vld [vmem:[%s7743_s4 + $0x2b8] sm:$0xff]  ;;  %v5395_v25 = vld [vmem:[%s7744_s5 + $0xf] ss:$0 sm:$0xff] }
 0xb4f   :  { %6074 = vmatprep.mubr.msk.f32.mxu0 %vm162_vm1, %v7373_v46  ;;  %6107 = vmatprep.mubr.msk.f32.mxu1 %vm162_vm1, %v7373_v46  ;;  %v6556_v30 = vpack.c.bf16 %v5437_v29, %v5436_v28 }
 0xb50   :  { %6493 = vmatprep.subr.bf16.mxu0 %v6492_v50  ;;  %6517 = vmatprep.subr.bf16.mxu1 %v6516_v51 }
 0xb52   :  { %6495 = vmatpush3.bf16.msra.mxu0 %v6492_v50  ;;  %6519 = vmatpush3.bf16.msra.mxu1 %v6516_v51 }
 0xb53   :  { %6505 = vmatprep.subr.bf16.mxu0 %v6504_v55  ;;  %6529 = vmatprep.subr.bf16.mxu1 %v6528_v56 }
 0xb55   :  { %6075 = vmatmul.mubr.msk.f32.vlgmr.msra.gmra.mrb[24].mxu0 %vm162_vm1, %v7375_v47  ;;  %6108 = vmatmul.mubr.msk.f32.vlgmr.msra.gmra.mrb[28].mxu1 %vm162_vm1, %v7375_v47 }
 0xb56   :  { %6507 = vmatpush3.bf16.msra.mxu0 %v6504_v55  ;;  %6096 = vmatprep.mubr.msk.f32.mxu0 %vm162_vm1, %v7373_v46 }
 0xb57   :  { %6531 = vmatpush3.bf16.msra.mxu1 %v6528_v56  ;;  %6129 = vmatprep.mubr.msk.f32.mxu1 %vm162_vm1, %v7373_v46 }
 0xb58   :  { %6509 = vmatprep.subr.bf16.mxu0 %v6508_v61  ;;  %6533 = vmatprep.subr.bf16.mxu1 %v6532_v0 }
 0xb5a   :  { %6511 = vmatpush3.bf16.msra.mxu0 %v6508_v61 }
 0xb5b   :  { %6535 = vmatpush3.bf16.msra.mxu1 %v6532_v0  ;;  %6521 = vmatprep.subr.bf16.mxu0 %v6520_v6 }
 0xb5c   :  { %6545 = vmatprep.subr.bf16.mxu1 %v6544_v5 }
 0xb5d   :  { %6097 = vmatmul.mubr.msk.f32.vlgmr.msra.gmra.mrb[26].mxu0 %vm162_vm1, %v7375_v47 }
 0xb5e   :  { %6130 = vmatmul.mubr.msk.f32.vlgmr.msra.gmra.mrb[30].mxu1 %vm162_vm1, %v7375_v47  ;;  %6523 = vmatpush3.bf16.msra.mxu0 %v6520_v6 }
 0xb5f   :  { %6118 = vmatprep.mubr.msk.f32.mxu0 %vm162_vm1, %v7373_v46  ;;  %6547 = vmatpush3.bf16.msra.mxu1 %v6544_v5 }
 0xb60   :  { %6151 = vmatprep.mubr.msk.f32.mxu1 %vm162_vm1, %v7373_v46  ;;  %6525 = vmatprep.subr.bf16.mxu0 %v6524_v11 }
 0xb61   :  { %6549 = vmatprep.subr.bf16.mxu1 %v6548_v14 }
 0xb62   :  { %6527 = vmatpush3.bf16.msra.mxu0 %v6524_v11 }
 0xb63   :  { %6551 = vmatpush3.bf16.msra.mxu1 %v6548_v14  ;;  %6537 = vmatprep.subr.bf16.mxu0 %v6536_v17 }
 0xb64   :  { %6561 = vmatprep.subr.bf16.mxu1 %v6560_v18 }
 0xb65   :  { %6119 = vmatmul.mubr.msk.f32.vlgmr.msra.gmra.mrb[28].mxu0 %vm162_vm1, %v7375_v47 }
 0xb66   :  { %6152 = vmatmul.mubr.msk.f32.vlgmr.msra.gmra.mrb[32].mxu1 %vm162_vm1, %v7375_v47  ;;  %6539 = vmatpush3.bf16.msra.mxu0 %v6536_v17  ;;  %v5458_v17 = vld [vmem:[%s7744_s5 + $0x16] ss:$0 sm:$0xff] }
 0xb67   :  { %6140 = vmatprep.mubr.msk.f32.mxu0 %vm162_vm1, %v7373_v46  ;;  %6563 = vmatpush3.bf16.msra.mxu1 %v6560_v18 }
 0xb68   :  { %6173 = vmatprep.mubr.msk.f32.mxu1 %vm162_vm1, %v7373_v46  ;;  %6541 = vmatprep.subr.bf16.mxu0 %v6540_v23 }
 0xb69   :  { %6565 = vmatprep.subr.bf16.mxu1 %v6564_v26 }
 0xb6a   :  { %6543 = vmatpush3.bf16.msra.mxu0 %v6540_v23 }
 0xb6b   :  { %6567 = vmatpush3.bf16.msra.mxu1 %v6564_v26  ;;  %6553 = vmatprep.subr.bf16.mxu0 %v6552_v27 }
 0xb6d   :  { %6141 = vmatmul.mubr.msk.f32.vlgmr.msra.gmra.mrb[30].mxu0 %vm162_vm1, %v7375_v47 }
 0xb6e   :  { %6174 = vmatmul.mubr.msk.f32.vlgmr.msra.gmra.mrb[34].mxu1 %vm162_vm1, %v7375_v47  ;;  %6555 = vmatpush3.bf16.msra.mxu0 %v6552_v27 }
 0xb6f   :  { %6162 = vmatprep.mubr.msk.f32.mxu0 %vm162_vm1, %v7373_v46  ;;  %6557 = vmatprep.subr.bf16.mxu0 %v6556_v30 }
 0xb72   :  { %6559 = vmatpush3.bf16.msra.mxu0 %v6556_v30 }
 0xb73   :  { %6569 = vmatprep.subr.bf16.mxu0 %v6568_v48 }
 0xb75   :  { %6163 = vmatmul.mubr.msk.f32.vlgmr.msra.gmra.mrb[32].mxu0 %vm162_vm1, %v7375_v47 }
 0xb76   :  { %6571 = vmatpush3.bf16.msra.mxu0 %v6568_v48  ;;  %6184 = vmatprep.mubr.msk.f32.mxu0 %vm162_vm1, %v7373_v46 }
 0xb77   :  { %6573 = vmatprep.subr.bf16.mxu0 %v6572_v35 }
 0xb7a   :  { %6575 = vmatpush3.bf16.msra.mxu0 %v6572_v35 }
 0xb7d   :  { %6185 = vmatmul.mubr.msk.f32.vlgmr.msra.gmra.mrb[34].mxu0 %vm162_vm1, %v7375_v47 }
 0xc20   :  { %v6065_v37 = vpop.f32.mrb[22].mxu0  ;;  %v6087_v38 = vpop.f32.mrb[26].mxu1 }
 0xc21   :  { %v2746_v39 = vpop.f32.mrb[23].mxu0  ;;  %v2906_v63 = vpop.f32.mrb[27].mxu1  ;;  %v3025_v0 = vadd.f32 %v6065_v37, %v5392_v36  ;;  %v3029_v14 = vadd.f32 %v6087_v38, %v5394_v58  ;;  %v5459_v37 = vld [vmem:[%s7744_s5 + $0x17] ss:$0 sm:$0xff] }
 0xc22   :  { %v3024_v40 = vadd.f32 %v5392_v36, %v2746_v39  ;;  %v3028_v1 = vadd.f32 %v5394_v58, %v2906_v63  ;;  %v6763_v58 = vld [vmem:[%s7740_s1 + $0x10] sm:$0xff] }
 0xc24   :  { %6191 = vmatprep.mubr.msk.f32.mxu1 %vm1285_vm2, %v3024_v40 }
 0xc28   :  { %v6076_v43 = vpop.f32.mrb[24].mxu0  ;;  %v6109_v44 = vpop.f32.mrb[28].mxu1 }
 0xc29   :  { %v3382_v45 = vadd.f32 %v6109_v44, %v5424_v41  ;;  %v2826_v49 = vpop.f32.mrb[25].mxu0  ;;  %v3103_v50 = vpop.f32.mrb[29].mxu1  ;;  %v3027_v28 = vadd.f32 %v6076_v43, %v5393_v42 }
 0xc2a   :  { %v3026_v51 = vadd.f32 %v5393_v42, %v2826_v49  ;;  %v3381_v52 = vadd.f32 %v5424_v41, %v3103_v50  ;;  %v6760_v42 = vld [vmem:[%s7740_s1 + $0x8] sm:$0xff] }
 0xc2c   :  { %v6576_v53 = vpack.c.bf16 %v3382_v45, %v3381_v52  ;;  %6198 = vmatprep.mubr.msk.f32.mxu0 %vm1285_vm2, %v3026_v51  ;;  %v6761_v45 = vld [vmem:[%s7740_s1] sm:$0xff] }
 0xc2e   :  { %6578 = vmatprep.subr.msk.bf16.mxu1 %vm7136_vm3, %v6576_v53 }
 0xc2f   :  { %6581 = vmatpush3.bf16.xpose.msk.msra.mxu1 %vm7136_vm3, %v6576_v53 }
 0xc30   :  { %v6098_v55 = vpop.f32.mrb[26].mxu0 }
 0xc31   :  { %v6131_v56 = vpop.f32.mrb[30].mxu1  ;;  %v2986_v57 = vpop.f32.mrb[27].mxu0  ;;  %v3031_v36 = vadd.f32 %v6098_v55, %v5395_v25  ;;  %v6762_v55 = vld [vmem:[%s7740_s1 + $0x18] sm:$0xff] }
 0xc32   :  { %v3386_v59 = vadd.f32 %v6131_v56, %v5426_v54  ;;  %v3263_v60 = vpop.f32.mrb[31].mxu1  ;;  %v3030_v30 = vadd.f32 %v5395_v25, %v2986_v57 }
 0xc33   :  { %v3385_v61 = vadd.f32 %v5426_v54, %v3263_v60  ;;  %v6764_v60 = vld [vmem:[%s7740_s1 + $0x28] sm:$0xff] }
 0xc35   :  { %v6588_v2 = vpack.c.bf16 %v3386_v59, %v3385_v61 }
 0xc36   :  { %6192 = vmatmul.mubr.msk.f32.vlgmr.msra.gmra.mrb[36].mxu1 %vm1285_vm2, %v3025_v0 }
 0xc37   :  { %6590 = vmatprep.subr.msk.bf16.mxu1 %vm7136_vm3, %v6588_v2  ;;  %6205 = vmatprep.mubr.msk.f32.mxu1 %vm1285_vm2, %v3028_v1  ;;  %v6765_v1 = vld [vmem:[%s7740_s1 + $0x20] sm:$0xff] }
 0xc38   :  { %6593 = vmatpush3.bf16.xpose.msk.msra.mxu1 %vm7136_vm3, %v6588_v2  ;;  %v6120_v6 = vpop.f32.mrb[28].mxu0 }
 0xc39   :  { %v3384_v5 = vadd.f32 %v6120_v6, %v5425_v3  ;;  %v6153_v62 = vpop.f32.mrb[32].mxu1  ;;  %v3183_v7 = vpop.f32.mrb[29].mxu0 }
 0xc3a   :  { %v3739_v8 = vadd.f32 %v6153_v62, %v5456_v4  ;;  %v3383_v10 = vadd.f32 %v5425_v3, %v3183_v7  ;;  %v3460_v11 = vpop.f32.mrb[33].mxu1  ;;  %v6766_v62 = vld [vmem:[%s7740_s1 + $0x38] sm:$0xff] }
 0xc3b   :  { %v3738_v12 = vadd.f32 %v5456_v4, %v3460_v11 }
 0xc3c   :  { %v6582_v13 = vpack.c.bf16 %v3384_v5, %v3383_v10  ;;  %v6767_v10 = vld [vmem:[%s7740_s1 + $0x30] sm:$0xff] }
 0xc3d   :  { %v6600_v15 = vpack.c.bf16 %v3739_v8, %v3738_v12 }
 0xc3e   :  { %6584 = vmatprep.subr.msk.bf16.mxu0 %vm7136_vm3, %v6582_v13 }
 0xc3f   :  { %6206 = vmatmul.mubr.msk.f32.vlgmr.msra.gmra.mrb[38].mxu1 %vm1285_vm2, %v3029_v14  ;;  %6601 = vmatprep.subr.bf16.mxu1 %v6600_v15 }
 0xc40   :  { %6587 = vmatpush3.bf16.xpose.msk.msra.mxu0 %vm7136_vm3, %v6582_v13  ;;  %6603 = vmatpush3.bf16.msra.mxu1 %v6600_v15  ;;  %v6142_v18 = vpop.f32.mrb[30].mxu0 }
 0xc41   :  { %v3388_v19 = vadd.f32 %v6142_v18, %v5427_v16  ;;  %v6175_v20 = vpop.f32.mrb[34].mxu1  ;;  %v3343_v21 = vpop.f32.mrb[31].mxu0 }
 0xc42   :  { %v3743_v22 = vadd.f32 %v6175_v20, %v5458_v17  ;;  %v3387_v23 = vadd.f32 %v5427_v16, %v3343_v21  ;;  %v3620_v24 = vpop.f32.mrb[35].mxu1 }
 0xc43   :  { %v3742_v26 = vadd.f32 %v5458_v17, %v3620_v24 }
 0xc44   :  { %v6594_v27 = vpack.c.bf16 %v3388_v19, %v3387_v23 }
 0xc45   :  { %v6608_v29 = vpack.c.bf16 %v3743_v22, %v3742_v26 }
 0xc46   :  { %6596 = vmatprep.subr.msk.bf16.mxu0 %vm7136_vm3, %v6594_v27 }
 0xc47   :  { %6199 = vmatmul.mubr.msk.f32.vlgmr.msra.gmra.mrb[36].mxu0 %vm1285_vm2, %v3027_v28 }
 0xc48   :  { %6599 = vmatpush3.bf16.xpose.msk.msra.mxu0 %vm7136_vm3, %v6594_v27  ;;  %6212 = vmatprep.mubr.msk.f32.mxu0 %vm1285_vm2, %v3030_v30  ;;  %v6164_v32 = vpop.f32.mrb[32].mxu0 }
 0xc49   :  { %v3741_v48 = vadd.f32 %v6164_v32, %v5457_v31  ;;  %6609 = vmatprep.subr.bf16.mxu0 %v6608_v29  ;;  %v3540_v33 = vpop.f32.mrb[33].mxu0 }
 0xc4a   :  { %v3740_v34 = vadd.f32 %v5457_v31, %v3540_v33 }
 0xc4c   :  { %v7577_v35 = vpack.c.bf16 %v3741_v48, %v3740_v34 }
 0xc4e   :  { %6605 = vmatprep.subr.bf16.mxu1 %v7577_v35 }
 0xc4f   :  { %6213 = vmatmul.mubr.msk.f32.vlgmr.msra.gmra.mrb[38].mxu0 %vm1285_vm2, %v3031_v36 }
 0xc50   :  { %6611 = vmatpush3.bf16.msra.mxu0 %v6608_v29  ;;  %v6186_v9 = vpop.f32.mrb[34].mxu0 }
 0xc51   :  { %v3745_v38 = vadd.f32 %v6186_v9, %v5459_v37  ;;  %v3700_v39 = vpop.f32.mrb[35].mxu0 }
 0xc52   :  { %v3744_v63 = vadd.f32 %v5459_v37, %v3700_v39 }
 0xc54   :  { %v7584_v40 = vpack.c.bf16 %v3745_v38, %v3744_v63 }
 0xd09   :  { %v6193_v41 = vpop.f32.mrb[36].mxu1 }
 0xd0a   :  { %v3830_v43 = vadd.f32 %v6760_v42, %v6193_v41  ;;  %v3824_v44 = vpop.f32.mrb[37].mxu1 }
 0xd0b   :  { %v3825_v49 = vadd.f32 %v6761_v45, %v3824_v44 }
 0xd0c   :  { %v4097_v50 = vsel %vm1634_vm4, %v3830_v43, -inf }
 0xd0d   :  { %4098 = vmax.xlane.f32.xlu1 %v4097_v50  ;;  %v4094_v51 = vsel %vm1634_vm4, %v3825_v49, -inf }
 0xd0e   :  { %4095 = vmax.xlane.f32.xlu0 %v4094_v51 }
 0xd12   :  { %v6207_v52 = vpop.f32.mrb[38].mxu1 }
 0xd13   :  { %v3998_v53 = vpop.f32.mrb[39].mxu1  ;;  %v4004_v61 = vadd.f32 %v6764_v60, %v6207_v52 }
 0xd14   :  { %v3999_v2 = vadd.f32 %v6765_v1, %v3998_v53 }
 0xd15   :  { %v4109_v4 = vsel %vm1634_vm4, %v4004_v61, -inf }
 0xd16   :  { %v4106_v5 = vsel %vm1634_vm4, %v3999_v2, -inf }
 0xd1a   :  { %v6200_v54 = vpop.f32.mrb[36].mxu0 }
 0xd1b   :  { %v3917_v56 = vadd.f32 %v6762_v55, %v6200_v54  ;;  %v3911_v57 = vpop.f32.mrb[37].mxu0 }
 0xd1c   :  { %v3912_v59 = vadd.f32 %v6763_v58, %v3911_v57 }
 0xd1d   :  { %v4103_v0 = vsel %vm1634_vm4, %v3917_v56, -inf }
 0xd1e   :  { %4104 = vmax.xlane.f32.xlu1 %v4103_v0  ;;  %v4100_v3 = vsel %vm1634_vm4, %v3912_v59, -inf }
 0xd1f   :  { %4101 = vmax.xlane.f32.xlu0 %v4100_v3 }
 0xd22   :  { %4110 = vmax.xlane.f32.xlu1 %v4109_v4  ;;  %v6214_v6 = vpop.f32.mrb[38].mxu0 }
 0xd23   :  { %v4091_v7 = vadd.f32 %v6766_v62, %v6214_v6  ;;  %4107 = vmax.xlane.f32.xlu0 %v4106_v5  ;;  %v4085_v8 = vpop.f32.mrb[39].mxu0 }
 0xd24   :  { %v4086_v11 = vadd.f32 %v6767_v10, %v4085_v8 }
 0xd25   :  { %v4115_v12 = vsel %vm1634_vm4, %v4091_v7, -inf }
 0xd26   :  { %4116 = vmax.xlane.f32.xlu1 %v4115_v12  ;;  %v4112_v13 = vsel %vm1634_vm4, %v4086_v11, -inf }
 0xd27   :  { %4113 = vmax.xlane.f32.xlu0 %v4112_v13 }
 0xd9a   :  { %v4099_v14 = vpop.xlane.xlu1 %4098 }
 0xd9b   :  { %v4119_v15 = vsub.f32 %v3830_v43, %v4099_v14  ;;  %v4096_v16 = vpop.xlane.xlu0 %4095 }
 0xd9c   :  { %v4118_v17 = vsub.f32 %v3825_v49, %v4096_v16 }
 0xd9d   :  { %v4128_v18 = vmul.f32 1.442695, %v4119_v15 }
 0xd9e   :  { %v4126_v19 = vmul.f32 1.442695, %v4118_v17  ;;  %v4508_v17 = vld [vmem:[#allocation4 + $0x20] sm:$0xff] }
 0xd9f   :  { %6716 = vpow2.f32 %v4128_v18  ;;  %6243 = vmatprep.subr.mxu0 %v4508_v17  ;;  %v4597_v18 = vld [vmem:[#allocation4 + $0x28] sm:$0xff] }
 0xda0   :  { %6718 = vpow2.f32 %v4126_v19 }
 0xda9   :  { %v6717_v20 = vpop.eup %6716 }
 0xdaa   :  { %v6719_v21 = vpop.eup %6718  ;;  %v4145_v22 = vsel %vm1634_vm4, %v6717_v20, 0.0 }
 0xdab   :  { %v4105_v23 = vpop.xlane.xlu1 %4104  ;;  %4146 = vadd.xlane.f32.xlu1 %v4145_v22  ;;  %v4142_v24 = vsel %vm1634_vm4, %v6719_v21, 0.0 }
 0xdac   :  { %v4121_v25 = vsub.f32 %v3917_v56, %v4105_v23  ;;  %v4102_v26 = vpop.xlane.xlu0 %4101  ;;  %4143 = vadd.xlane.f32.xlu0 %v4142_v24  ;;  %v4767_v23 = vld [vmem:[#allocation4 + $0x38] sm:$0xff] }
 0xdad   :  { %v4120_v27 = vsub.f32 %v3912_v59, %v4102_v26 }
 0xdae   :  { %v4132_v28 = vmul.f32 1.442695, %v4121_v25 }
 0xdaf   :  { %v4130_v29 = vmul.f32 1.442695, %v4120_v27  ;;  %v4111_v30 = vpop.xlane.xlu1 %4110 }
 0xdb0   :  { %6720 = vpow2.f32 %v4132_v28  ;;  %v4123_v31 = vsub.f32 %v4004_v61, %v4111_v30  ;;  %v4108_v32 = vpop.xlane.xlu0 %4107  ;;  %v5486_v28 = vld [vmem:[%s7749_s10 + $0x9] ss:$0 sm:$0xff] }
 0xdb1   :  { %6722 = vpow2.f32 %v4130_v29  ;;  %v4122_v48 = vsub.f32 %v3999_v2, %v4108_v32 }
 0xdb2   :  { %v4136_v33 = vmul.f32 1.442695, %v4123_v31 }
 0xdb3   :  { %v4134_v34 = vmul.f32 1.442695, %v4122_v48  ;;  %v4117_v36 = vpop.xlane.xlu1 %4116 }
 0xdb4   :  { %6724 = vpow2.f32 %v4136_v33  ;;  %v4125_v37 = vsub.f32 %v4091_v7, %v4117_v36  ;;  %v4114_v9 = vpop.xlane.xlu0 %4113 }
 0xdb5   :  { %6726 = vpow2.f32 %v4134_v34  ;;  %v4124_v38 = vsub.f32 %v4086_v11, %v4114_v9 }
 0xdb6   :  { %v4140_v39 = vmul.f32 1.442695, %v4125_v37 }
 0xdb7   :  { %v4138_v63 = vmul.f32 1.442695, %v4124_v38 }
 0xdb8   :  { %6728 = vpow2.f32 %v4140_v39 }
 0xdb9   :  { %6730 = vpow2.f32 %v4138_v63 }
 0xdba   :  { %v6721_v41 = vpop.eup %6720 }
 0xdbb   :  { %v6723_v42 = vpop.eup %6722  ;;  %v4151_v43 = vsel %vm1634_vm4, %v6721_v41, 0.0 }
 0xdbc   :  { %4152 = vadd.xlane.f32.xlu1 %v4151_v43  ;;  %v4148_v44 = vsel %vm1634_vm4, %v6723_v42, 0.0 }
 0xdbd   :  { %4149 = vadd.xlane.f32.xlu0 %v4148_v44 }
 0xdbe   :  { %v6725_v45 = vpop.eup %6724 }
 0xdbf   :  { %v6727_v49 = vpop.eup %6726  ;;  %v4157_v50 = vsel %vm1634_vm4, %v6725_v45, 0.0 }
 0xdc0   :  { %4158 = vadd.xlane.f32.xlu1 %v4157_v50  ;;  %v4154_v51 = vsel %vm1634_vm4, %v6727_v49, 0.0  ;;  %v5497_v50 = vld [vmem:[%s7746_s7 + $0x30] sm:$0xff] }
 0xdc1   :  { %4155 = vadd.xlane.f32.xlu0 %v4154_v51  ;;  %v5498_v51 = vld [vmem:[%s7746_s7 + $0x38] sm:$0xff] }
 0xdc2   :  { %v6729_v52 = vpop.eup %6728 }
 0xdc3   :  { %v6731_v53 = vpop.eup %6730  ;;  %v4163_v54 = vsel %vm1634_vm4, %v6729_v52, 0.0 }
 0xdc4   :  { %4164 = vadd.xlane.f32.xlu1 %v4163_v54  ;;  %v4160_v55 = vsel %vm1634_vm4, %v6731_v53, 0.0 }
 0xdc5   :  { %4161 = vadd.xlane.f32.xlu0 %v4160_v55 }
 0xe38   :  { %v4147_v56 = vpop.xlane.xlu1 %4146 }
 0xe39   :  { %6732 = vrcp.f32 %v4147_v56  ;;  %v4144_v57 = vpop.xlane.xlu0 %4143 }
 0xe3a   :  { %6734 = vrcp.f32 %v4144_v57 }
 0xe43   :  { %v6733_v58 = vpop.eup %6732 }
 0xe44   :  { %v6735_v59 = vpop.eup %6734  ;;  %v4175_v61 = vmul.f32 %v6733_v58, %v6717_v20  ;;  %v4682_v20 = vld [vmem:[#allocation4 + $0x30] sm:$0xff] }
 0xe45   :  { %v4174_v60 = vmul.f32 %v6735_v59, %v6719_v21 }
 0xe47   :  { %6219 = vmatprep.mubr.msk.f32.mxu1 %vm1634_vm4, %v4174_v60  ;;  %v5493_v60 = vld [vmem:[%s7749_s10 + $0xa] ss:$0 sm:$0xff] }
 0xe48   :  { %6220 = vmatmul.mubr.msk.f32.vlgmr.msra.gmra.mrb[40].mxu1 %vm1634_vm4, %v4175_v61 }
 0xe49   :  { %v4153_v0 = vpop.xlane.xlu1 %4152  ;;  %6607 = vmatpush3.bf16.msra.mxu1 %v7577_v35 }
 0xe4a   :  { %6736 = vrcp.f32 %v4153_v0  ;;  %6613 = vmatprep.subr.bf16.mxu1 %v7584_v40  ;;  %v4150_v1 = vpop.xlane.xlu0 %4149 }
 0xe4b   :  { %6738 = vrcp.f32 %v4150_v1 }
 0xe4d   :  { %v4159_v2 = vpop.xlane.xlu1 %4158 }
 0xe4e   :  { %6740 = vrcp.f32 %v4159_v2  ;;  %v4156_v3 = vpop.xlane.xlu0 %4155  ;;  %v5494_v2 = vld [vmem:[%s7749_s10 + $0xb] ss:$0 sm:$0xff] }
 0xe4f   :  { %6742 = vrcp.f32 %v4156_v3 }
 0xe51   :  { %v4165_v4 = vpop.xlane.xlu1 %4164 }
 0xe52   :  { %6744 = vrcp.f32 %v4165_v4  ;;  %v4162_v6 = vpop.xlane.xlu0 %4161 }
 0xe53   :  { %6746 = vrcp.f32 %v4162_v6 }
 0xe54   :  { %v6737_v5 = vpop.eup %6736 }
 0xe55   :  { %v6739_v62 = vpop.eup %6738  ;;  %v4177_v8 = vmul.f32 %v6737_v5, %v6721_v41 }
 0xe56   :  { %v4176_v7 = vmul.f32 %v6739_v62, %v6723_v42  ;;  %v5502_v62 = vld [vmem:[%s7747_s8 + $0x40] sm:$0xff] }
 0xe58   :  { %v6741_v10 = vpop.eup %6740  ;;  %6226 = vmatprep.mubr.msk.f32.mxu1 %vm1634_vm4, %v4176_v7  ;;  %v5503_v7 = vld [vmem:[%s7747_s8 + $0x48] sm:$0xff] }
 0xe59   :  { %v6743_v35 = vpop.eup %6742  ;;  %6227 = vmatmul.mubr.msk.f32.vlgmr.msra.gmra.mrb[42].mxu1 %vm1634_vm4, %v4177_v8  ;;  %v4179_v12 = vmul.f32 %v6741_v10, %v6725_v45  ;;  %v5496_v45 = vld [vmem:[%s7746_s7 + $0x28] sm:$0xff]  ;;  %v6624_v8 = vpack.c.bf16 %v5503_v7, %v5502_v62  ;;  %v5504_v10 = vld [vmem:[%s7747_s8 + $0x50] sm:$0xff] }
 0xe5a   :  { %6615 = vmatpush3.bf16.msra.mxu1 %v7584_v40  ;;  %v4178_v11 = vmul.f32 %v6743_v35, %v6727_v49  ;;  %v5505_v35 = vld [vmem:[%s7747_s8 + $0x58] sm:$0xff] }
 0xe5c   :  { %v6745_v13 = vpop.eup %6744  ;;  %6233 = vmatprep.mubr.msk.f32.mxu0 %vm1634_vm4, %v4178_v11  ;;  %v6628_v11 = vpack.c.bf16 %v5505_v35, %v5504_v10  ;;  %v5515_v35 = vld [vmem:[%s7749_s10 + $0x10] ss:$0 sm:$0xff] }
 0xe5d   :  { %v6747_v14 = vpop.eup %6746  ;;  %6234 = vmatmul.mubr.msk.f32.vlgmr.msra.gmra.mrb[40].mxu0 %vm1634_vm4, %v4179_v12  ;;  %v4181_v16 = vmul.f32 %v6745_v13, %v6729_v52  ;;  %v6620_v52 = vpack.c.bf16 %v5498_v51, %v5497_v50  ;;  %v5506_v12 = vld [vmem:[%s7747_s8 + $0x60] sm:$0xff]  ;;  %v5507_v13 = vld [vmem:[%s7747_s8 + $0x68] sm:$0xff] }
 0xe5e   :  { %v4180_v15 = vmul.f32 %v6747_v14, %v6731_v53  ;;  %6244 = vmatpush3.msra.mxu0 %v4508_v17  ;;  %v6632_v14 = vpack.c.bf16 %v5507_v13, %v5506_v12  ;;  %v5131_v51 = vld [vmem:[%s7748_s9] sm:$0xff] }
 0xe5f   :  { %6248 = vmatprep.subr.mxu0 %v4597_v18 }
 0xe60   :  { %6240 = vmatprep.mubr.msk.f32.mxu1 %vm1634_vm4, %v4180_v15  ;;  %v5508_v15 = vld [vmem:[%s7747_s8 + $0x70] sm:$0xff] }
 0xe61   :  { %6241 = vmatmul.mubr.msk.f32.vlgmr.msra.gmra.mrb[44].mxu1 %vm1634_vm4, %v4181_v16  ;;  %v5509_v16 = vld [vmem:[%s7747_s8 + $0x78] sm:$0xff] }
 0xe62   :  { %v6636_v17 = vpack.c.bf16 %v5509_v16, %v5508_v15 }
 0xf1b   :  { %v6221_v40 = vpop.f32.mrb[40].mxu1 }
 0xf1c   :  { %v4254_v19 = vpop.f32.mrb[41].mxu1 }
 0xf1d   :  { %6245 = vmatprep.mubr.msk.f32.mxu0 %vm1285_vm2, %v4254_v19 }
 0xf1e   :  { %6246 = vmatmul.mubr.msk.f32.vlgmr.msra.gmra.mrb[42].mxu0 %vm1285_vm2, %v6221_v40 }
 0xf1f   :  { %6249 = vmatpush3.msra.mxu0 %v4597_v18  ;;  %v5499_v18 = vld [vmem:[%s7749_s10 + $0xc] ss:$0 sm:$0xff] }
 0xf20   :  { %6253 = vmatprep.subr.mxu0 %v4682_v20 }
 0xf2c   :  { %v6228_v21 = vpop.f32.mrb[42].mxu1 }
 0xf2d   :  { %v4335_v22 = vpop.f32.mrb[43].mxu1 }
 0xf2e   :  { %6250 = vmatprep.mubr.msk.f32.mxu0 %vm1285_vm2, %v4335_v22 }
 0xf2f   :  { %6251 = vmatmul.mubr.msk.f32.vlgmr.msra.gmra.mrb[42].mxu0 %vm1285_vm2, %v6228_v21 }
 0xf30   :  { %6254 = vmatpush3.msra.mxu0 %v4682_v20  ;;  %v6235_v24 = vpop.f32.mrb[40].mxu0 }
 0xf31   :  { %v4416_v25 = vpop.f32.mrb[41].mxu0  ;;  %6258 = vmatprep.subr.mxu0 %v4767_v23 }
 0xf32   :  { %6255 = vmatprep.mubr.msk.f32.mxu0 %vm1285_vm2, %v4416_v25 }
 0xf34   :  { %v6242_v26 = vpop.f32.mrb[44].mxu1 }
 0xf35   :  { %v4497_v27 = vpop.f32.mrb[45].mxu1 }
 0xf37   :  { %6256 = vmatmul.mubr.msk.f32.vlgmr.msra.gmra.mrb[42].mxu0 %vm1285_vm2, %v6235_v24 }
 0xf38   :  { %6259 = vmatpush3.msra.mxu0 %v4767_v23  ;;  %6260 = vmatprep.mubr.msk.f32.mxu0 %vm1285_vm2, %v4497_v27 }
 0xf3f   :  { %6261 = vmatmul.mubr.msk.f32.vlgmr.msra.gmra.mrb[42].mxu0 %vm1285_vm2, %v6242_v26 }
0x1012   :  { %v6262_v29 = vpop.f32.mrb[42].mxu0 }
0x1013   :  { %v6650_v30 = vadd.f32 %v6262_v29, %v5486_v28  ;;  %v4840_v31 = vpop.f32.mrb[43].mxu0 }
0x1014   :  { %v6651_v32 = vadd.f32 %v5486_v28, %v4840_v31 }
0x1015   :  { %v4852_v48 = vadd.f32 %v6650_v30, %v7375_v47 }
0x1016   :  { %v4851_v33 = vadd.f32 %v6651_v32, %v7373_v46  ;;  %v5495_v46 = vld [vmem:[%s7746_s7 + $0x20] sm:$0xff]  ;;  %v5510_v32 = vld [vmem:[%s7749_s10 + $0xd] ss:$0 sm:$0xff] }
0x1017   :  { %v4858_v34 = vsel %vm162_vm1, %v4852_v48, 0.0  ;;  %v6616_v49 = vpack.c.bf16 %v5496_v45, %v5495_v46 }
0x1018   :  { %4859 = vadd.xlane.f32.xlu1 %v4858_v34  ;;  %v4855_v36 = vsel %vm162_vm1, %v4851_v33, 0.0 }
0x1019   :  { %4856 = vadd.xlane.f32.xlu0 %v4855_v36  ;;  %6617 = vmatprep.subr.bf16.mxu1 %v6616_v49 }
0x101a   :  { %6619 = vmatpush3.bf16.msra.mxu1 %v6616_v49 }
0x101b   :  { %6621 = vmatprep.subr.bf16.mxu1 %v6620_v52 }
0x101e   :  { %6623 = vmatpush3.bf16.msra.mxu1 %v6620_v52  ;;  %v5132_v52 = vld [vmem:[%s7748_s9 + $0x8] sm:$0xff] }
0x101f   :  { %6625 = vmatprep.subr.bf16.mxu1 %v6624_v8 }
0x10a5   :  { %v4860_v37 = vpop.xlane.xlu1 %4859 }
0x10a6   :  { %v4862_v9 = vmul.f32 0.03125, %v4860_v37  ;;  %v4857_v38 = vpop.xlane.xlu0 %4856 }
0x10a7   :  { %v4861_v39 = vmul.f32 0.03125, %v4857_v38 }
0x10a8   :  { %v4864_v63 = vsub.f32 %v4852_v48, %v4862_v9 }
0x10a9   :  { %v4863_v41 = vsub.f32 %v4851_v33, %v4861_v39 }
0x10aa   :  { %v4866_v42 = vmul.f32 %v4864_v63, %v4864_v63 }
0x10ab   :  { %v4865_v43 = vmul.f32 %v4863_v41, %v4863_v41 }
0x10ac   :  { %v4870_v44 = vsel %vm162_vm1, %v4866_v42, 0.0 }
0x10ad   :  { %4871 = vadd.xlane.f32.xlu1 %v4870_v44  ;;  %v4867_v47 = vsel %vm162_vm1, %v4865_v43, 0.0 }
0x10ae   :  { %4868 = vadd.xlane.f32.xlu0 %v4867_v47 }
0x113a   :  { %v4872_v53 = vpop.xlane.xlu1 %4871 }
0x113b   :  { %v4874_v54 = vmul.f32 0.03125, %v4872_v53  ;;  %v4869_v55 = vpop.xlane.xlu0 %4868  ;;  %v6640_v53 = vpack.c.bf16 %v5132_v52, %v5131_v51 }
0x113c   :  { %v4873_v56 = vmul.f32 0.03125, %v4869_v55  ;;  %v5134_v55 = vld [vmem:[%s7748_s9 + $0x18] sm:$0xff] }
0x113d   :  { %v4876_v57 = vadd.f32 1e-12, %v4874_v54  ;;  %v5133_v54 = vld [vmem:[%s7748_s9 + $0x10] sm:$0xff]  ;;  %6641 = vmatprep.subr.bf16.mxu0 %v6640_v53 }
0x113e   :  { %v4875_v58 = vadd.f32 1e-12, %v4873_v56  ;;  %v6644_v56 = vpack.c.bf16 %v5134_v55, %v5133_v54  ;;  %6643 = vmatpush3.bf16.msra.mxu0 %v6640_v53 }
0x113f   :  { %6748 = vrsqrt.f32 %v4876_v57 }
0x1140   :  { %6750 = vrsqrt.f32 %v4875_v58  ;;  %6645 = vmatprep.subr.bf16.mxu0 %v6644_v56 }
0x1142   :  { %6647 = vmatpush3.bf16.msra.mxu0 %v6644_v56 }
0x1149   :  { %v6749_v59 = vpop.eup %6748 }
0x114a   :  { %v6751_v61 = vpop.eup %6750  ;;  %v4880_v0 = vmul.f32 %v6749_v59, %v4864_v63 }
0x114b   :  { %v4879_v1 = vmul.f32 %v6751_v61, %v4863_v41 }
0x114c   :  { %v4886_v3 = vmul.f32 %v5493_v60, %v4880_v0 }
0x114d   :  { %v4885_v4 = vmul.f32 %v5493_v60, %v4879_v1 }
0x114e   :  { %v4892_v5 = vadd.f32 %v5494_v2, %v4886_v3 }
0x114f   :  { %v4891_v6 = vadd.f32 %v5494_v2, %v4885_v4  ;;  %v5513_v2 = vld [vmem:[%s7749_s10 + $0xe] ss:$0 sm:$0xff] }
0x1151   :  { %6271 = vmatprep.mubr.msk.f32.mxu1 %vm162_vm1, %v4891_v6 }
0x1152   :  { %6272 = vmatmul.mubr.msk.f32.vlgmr.msra.gmra.mrb[46].mxu1 %vm162_vm1, %v4892_v5 }
0x1153   :  { %6627 = vmatpush3.bf16.msra.mxu1 %v6624_v8 }
0x1154   :  { %6629 = vmatprep.subr.bf16.mxu1 %v6628_v11 }
0x1157   :  { %6631 = vmatpush3.bf16.msra.mxu1 %v6628_v11 }
0x1158   :  { %6633 = vmatprep.subr.bf16.mxu1 %v6632_v14 }
0x115b   :  { %6635 = vmatpush3.bf16.msra.mxu1 %v6632_v14 }
0x115c   :  { %6637 = vmatprep.subr.bf16.mxu1 %v6636_v17 }
0x115f   :  { %6639 = vmatpush3.bf16.msra.mxu1 %v6636_v17 }
0x1225   :  { %v6273_v40 = vpop.f32.mrb[46].mxu1 }
0x1226   :  { %v4981_v19 = vadd.f32 %v6273_v40, %v5499_v18  ;;  %v4975_v20 = vpop.f32.mrb[47].mxu1 }
0x1227   :  { %v4976_v21 = vadd.f32 %v5499_v18, %v4975_v20 }
0x1228   :  { %v4987_v22 = vmul.f32 0.70710677, %v4981_v19  ;;  %v4985_v29 = vmul.f32 0.5, %v4981_v19 }
0x1229   :  { %v4986_v23 = vmul.f32 0.70710677, %v4976_v21  ;;  %v4984_v27 = vmul.f32 0.5, %v4976_v21 }
0x122a   :  { %6752 = verf.f32 %v4987_v22 }
0x122b   :  { %6754 = verf.f32 %v4986_v23 }
0x1234   :  { %v6753_v24 = vpop.eup %6752 }
0x1235   :  { %v6755_v25 = vpop.eup %6754  ;;  %v4991_v26 = vadd.f32 1.0, %v6753_v24 }
0x1236   :  { %v4990_v28 = vadd.f32 1.0, %v6755_v25 }
0x1237   :  { %v4993_v31 = vmul.f32 %v4991_v26, %v4985_v29 }
0x1238   :  { %v4992_v30 = vmul.f32 %v4990_v28, %v4984_v27 }
0x123a   :  { %6290 = vmatprep.mubr.msk.f32.mxu1 %vm78_vm0, %v4992_v30 }
0x123b   :  { %6291 = vmatmul.mubr.msk.f32.vlgmr.msra.gmra.mrb[48].mxu1 %vm78_vm0, %v4993_v31 }
0x130e   :  { %v6292_v48 = vpop.f32.mrb[48].mxu1 }
0x130f   :  { %v5086_v33 = vadd.f32 %v6292_v48, %v5510_v32  ;;  %v5080_v34 = vpop.f32.mrb[49].mxu1 }
0x1310   :  { %v5081_v36 = vadd.f32 %v5510_v32, %v5080_v34 }
0x1311   :  { %v5090_v37 = vadd.f32 %v5086_v33, %v4892_v5  ;;  %v5514_v5 = vld [vmem:[%s7749_s10 + $0xf] ss:$0 sm:$0xff] }
0x1312   :  { %v5089_v9 = vadd.f32 %v5081_v36, %v4891_v6 }
0x1313   :  { %v5096_v38 = vsel %vm162_vm1, %v5090_v37, 0.0 }
0x1314   :  { %5097 = vadd.xlane.f32.xlu1 %v5096_v38  ;;  %v5093_v39 = vsel %vm162_vm1, %v5089_v9, 0.0 }
0x1315   :  { %5094 = vadd.xlane.f32.xlu0 %v5093_v39 }
0x13a1   :  { %v5098_v63 = vpop.xlane.xlu1 %5097 }
0x13a2   :  { %v5100_v41 = vmul.f32 0.03125, %v5098_v63  ;;  %v5095_v42 = vpop.xlane.xlu0 %5094 }
0x13a3   :  { %v5099_v43 = vmul.f32 0.03125, %v5095_v42 }
0x13a4   :  { %v5102_v44 = vsub.f32 %v5090_v37, %v5100_v41 }
0x13a5   :  { %v5101_v47 = vsub.f32 %v5089_v9, %v5099_v43 }
0x13a6   :  { %v5104_v46 = vmul.f32 %v5102_v44, %v5102_v44 }
0x13a7   :  { %v5103_v45 = vmul.f32 %v5101_v47, %v5101_v47 }
0x13a8   :  { %v5108_v49 = vsel %vm162_vm1, %v5104_v46, 0.0 }
0x13a9   :  { %5109 = vadd.xlane.f32.xlu1 %v5108_v49  ;;  %v5105_v50 = vsel %vm162_vm1, %v5103_v45, 0.0 }
0x13aa   :  { %5106 = vadd.xlane.f32.xlu0 %v5105_v50 }
0x1436   :  { %v5110_v57 = vpop.xlane.xlu1 %5109 }
0x1437   :  { %v5112_v58 = vmul.f32 0.03125, %v5110_v57  ;;  %v5107_v59 = vpop.xlane.xlu0 %5106 }
0x1438   :  { %v5111_v60 = vmul.f32 0.03125, %v5107_v59 }
0x1439   :  { %v5114_v61 = vadd.f32 1e-12, %v5112_v58 }
0x143a   :  { %v5113_v0 = vadd.f32 1e-12, %v5111_v60 }
0x143b   :  { %6756 = vrsqrt.f32 %v5114_v61 }
0x143c   :  { %6758 = vrsqrt.f32 %v5113_v0 }
0x1445   :  { %v6757_v1 = vpop.eup %6756 }
0x1446   :  { %v6759_v3 = vpop.eup %6758  ;;  %v5118_v4 = vmul.f32 %v6757_v1, %v5102_v44 }
0x1447   :  { %v5117_v6 = vmul.f32 %v6759_v3, %v5101_v47 }
0x1448   :  { %v5124_v62 = vmul.f32 %v5513_v2, %v5118_v4 }
0x1449   :  { %v5123_v7 = vmul.f32 %v5513_v2, %v5117_v6 }
0x144a   :  { %v5130_v10 = vadd.f32 %v5514_v5, %v5124_v62 }
0x144b   :  { %v5129_v8 = vadd.f32 %v5514_v5, %v5123_v7 }
0x144d   :  { %6301 = vmatprep.mubr.msk.f32.mxu0 %vm162_vm1, %v5129_v8 }
0x144e   :  { %6302 = vmatmul.mubr.msk.f32.vlgmr.msra.gmra.mrb[44].mxu0 %vm162_vm1, %v5130_v10 }
0x1521   :  { %v6303_v11 = vpop.f32.mrb[44].mxu0 }
0x1522   :  { %v5218_v12 = vadd.f32 %v6303_v11, %v5515_v35  ;;  %v5212_v13 = vpop.f32.mrb[45].mxu0 }
0x1523   :  { %v5213_v14 = vadd.f32 %v5515_v35, %v5212_v13 }
0x1524   :  { %5222 = vst [vmem:[%s7750_s11 + $0x8] sm:$0xff] %v5218_v12 }
0x1525   :  { %5221 = vst [vmem:[%s7750_s11] sm:$0xff] %v5213_v14 }
0x1526   :  { %5227 = vsyncpa [#allocation3], 1 }
0x1527   :  { %5228 = vsyncpa [#allocation5], 1 }

</bundles_post_ra>
